<compile_context>
chip_gen: v7x
topology: tpu7x:2x2x1
jax: 0.10.0
libtpu: 0.0.40
codegen_flags: <defaults>
</compile_context>

<pallas_src>
import functools

import jax
import jax.numpy as jnp
from jax.experimental import pallas as pl
from jax.experimental.pallas import tpu as pltpu

LN_EPS = 1e-5  # PyTorch LayerNorm default eps


# ---------------------------------------------------------------------------
# in-kernel helpers
# ---------------------------------------------------------------------------
def _layer_norm(x, w, b):
    mu = jnp.mean(x, axis=-1, keepdims=True)
    var = jnp.mean(jnp.square(x - mu), axis=-1, keepdims=True)
    return (x - mu) * jax.lax.rsqrt(var + LN_EPS) * w + b


def _gelu_exact(x):
    # F.gelu default = exact (erf-based) GELU
    return 0.5 * x * (1.0 + jax.lax.erf(x * 0.7071067811865475))


# ---------------------------------------------------------------------------
# fused encoder kernel: grid = (batch_blocks, layer); final LN fused on last layer
# ---------------------------------------------------------------------------
def _fused_encoder_kernel(n_heads, n_layers,
                          x_ref,
                          wqkv_ref, bqkv_ref, wo_ref, bo_ref,
                          w1_ref, b1_ref, w2_ref, b2_ref,
                          ln1w_ref, ln1b_ref, ln2w_ref, ln2b_ref,
                          lnfw_ref, lnfb_ref,
                          o_ref,
                          x_scratch):
    layer = pl.program_id(1)

    @pl.when(layer == 0)
    def _():
        x_scratch[...] = x_ref[...].astype(jnp.float32)

    Bb, S, D = x_scratch.shape
    H = n_heads
    dh = D // H

    x = x_scratch[...].reshape(Bb * S, D)                   # (Bb*S, D) f32, VMEM-resident

    # ---- self-attention block: x = x + SA(LN1(x)) ----
    h = _layer_norm(x, ln1w_ref[...], ln1b_ref[...])
    hb = h.astype(jnp.bfloat16)                             # bf16 MXU operand
    # fused QKV projection: one MXU matmul with N = 3D (scale folded into Q cols)
    qkv = jnp.dot(hb, wqkv_ref[...], preferred_element_type=jnp.float32) + bqkv_ref[...]
    qkv_b = qkv.astype(jnp.bfloat16)

    def head_split(off):
        # (Bb*S, 3D) bf16 -> (H*Bb, S, dh) bf16, static lane slices (offsets % 8 == 0)
        return jnp.stack(
            [qkv_b[:, off + hd * dh: off + (hd + 1) * dh].reshape(Bb, S, dh)
             for hd in range(H)], axis=0).reshape(H * Bb, S, dh)

    qh = head_split(0)
    kh = head_split(D)
    vh = head_split(2 * D)

    # scores / softmax in f32; 1/sqrt(dh) already folded into wq at pack time
    s = jnp.einsum('hqd,hkd->hqk', qh, kh, preferred_element_type=jnp.float32)
    s = s - jnp.max(s, axis=-1, keepdims=True)
    p = jnp.exp(s)
    p = p * pl.reciprocal(jnp.sum(p, axis=-1, keepdims=True), approx=True)
    ctx = jnp.einsum('hqk,hkd->hqd', p.astype(jnp.bfloat16), vh,
                     preferred_element_type=jnp.float32)    # (H*Bb, S, dh)

    # reassemble heads once -> one big K=D output projection
    ctx4 = ctx.astype(jnp.bfloat16).reshape(H, Bb, S, dh)
    ctx_sd = jnp.concatenate([ctx4[hd] for hd in range(H)], axis=-1)  # (Bb, S, D)
    attn = jnp.dot(ctx_sd.reshape(Bb * S, D), wo_ref[...],
                   preferred_element_type=jnp.float32) + bo_ref[...]
    x = x + attn

    # ---- feed-forward block: x = x + FFN(LN2(x)) ----
    h2 = _layer_norm(x, ln2w_ref[...], ln2b_ref[...]).astype(jnp.bfloat16)
    ff = jnp.dot(h2, w1_ref[...], preferred_element_type=jnp.float32) + b1_ref[...]
    ff = _gelu_exact(ff).astype(jnp.bfloat16)
    ff = jnp.dot(ff, w2_ref[...], preferred_element_type=jnp.float32) + b2_ref[...]
    x = x + ff

    x_scratch[...] = x.reshape(Bb, S, D)

    # final LayerNorm + the single HBM writeback, only on the last layer iteration
    @pl.when(layer == n_layers - 1)
    def _():
        y = _layer_norm(x, lnfw_ref[...], lnfb_ref[...])
        o_ref[...] = y.reshape(Bb, S, D).astype(o_ref.dtype)


# ---------------------------------------------------------------------------
# wrappers
# ---------------------------------------------------------------------------
def _pick_batch_block(B):
    """Largest divisor of B that still leaves >= 2 blocks on the (parallel) batch
    axis, so both v7x TensorCores get work, while amortizing weight DMA by Bblk."""
    if B <= 1:
        return 1
    for d in range(B // 2, 0, -1):
        if B % d == 0:
            return d
    return 1


def _vmem_limit_bytes(Bblk, S, D, FF, H):
    """Derive the scoped-VMEM hint from actual block sizes; clamp under the
    physical per-core capacity (64 MiB on v7x, 128 MiB on v5e/v6e)."""
    bf16, f32 = 2, 4
    # double-buffered per-layer weight blocks (bf16 matmuls + f32 biases / LN rows)
    w_layer = (D * 3 * D + D * D + D * FF + FF * D) * bf16 \
              + (3 * D + 2 * D + FF + 4 * D) * f32
    weights = 2 * w_layer
    # activation blocks (in + out double-buffered) + resident f32 scratch
    acts = 5 * Bblk * S * D * f32
    # transient attention / FFN intermediates (scores, probs, qkv, ffn hidden, temps)
    inter = Bblk * (H * S * S * (f32 + bf16) + S * 3 * D * (f32 + bf16)
                    + S * FF * (f32 + bf16) + 6 * S * D * f32)
    need = weights + acts + inter + (4 << 20)
    try:
        cap = int(pltpu.get_tpu_info().vmem_capacity_bytes)
    except Exception:
        cap = 64 << 20  # assume the v7x (smallest) per-core VMEM if query fails
    return int(min(max(need, 32 << 20), cap - (8 << 20)))


def fused_encoder(x_emb, packed, n_heads, n_layers, batch_block=None):
    B, S, D = x_emb.shape
    FF = packed["w1"].shape[-1]
    assert D % n_heads == 0
    assert S % 8 == 0, "sequence length must be a multiple of 8 (sublane tile)"
    Bblk = _pick_batch_block(B) if batch_block is None else batch_block
    assert B % Bblk == 0

    x_map = lambda b, l: (b, 0, 0)
    w_map = lambda b, l: (l, 0, 0)
    f_map = lambda b, l: (0, 0)

    in_specs = [
        pl.BlockSpec((Bblk, S, D), x_map),        # embeddings (one DMA per batch block)
        pl.BlockSpec((None, D, 3 * D), w_map),    # wqkv (pre-transposed, scale folded)
        pl.BlockSpec((None, 1, 3 * D), w_map),    # bqkv
        pl.BlockSpec((None, D, D), w_map),        # wo  (pre-transposed, single matrix)
        pl.BlockSpec((None, 1, D), w_map),        # bo
        pl.BlockSpec((None, D, FF), w_map),       # w1  (pre-transposed)
        pl.BlockSpec((None, 1, FF), w_map),       # b1
        pl.BlockSpec((None, FF, D), w_map),       # w2  (pre-transposed)
        pl.BlockSpec((None, 1, D), w_map),        # b2
        pl.BlockSpec((None, 1, D), w_map),        # ln1_w
        pl.BlockSpec((None, 1, D), w_map),        # ln1_b
        pl.BlockSpec((None, 1, D), w_map),        # ln2_w
        pl.BlockSpec((None, 1, D), w_map),        # ln2_b
        pl.BlockSpec((1, D), f_map),              # final LayerNorm weight
        pl.BlockSpec((1, D), f_map),              # final LayerNorm bias
    ]

    return pl.pallas_call(
        functools.partial(_fused_encoder_kernel, n_heads, n_layers),
        out_shape=jax.ShapeDtypeStruct((B, S, D), x_emb.dtype),
        grid_spec=pltpu.PrefetchScalarGridSpec(
            num_scalar_prefetch=0,
            grid=(B // Bblk, n_layers),           # layer (reduction-like) axis last
            in_specs=in_specs,
            out_specs=pl.BlockSpec((Bblk, S, D), x_map),
            scratch_shapes=[pltpu.VMEM((Bblk, S, D), jnp.float32)],
        ),
        compiler_params=pltpu.CompilerParams(
            dimension_semantics=("parallel", "arbitrary"),
            vmem_limit_bytes=_vmem_limit_bytes(Bblk, S, D, FF, n_heads),
        ),
    )(x_emb,
      packed["wqkv"], packed["bqkv"], packed["wo"], packed["bo"],
      packed["w1"], packed["b1"], packed["w2"], packed["b2"],
      packed["ln1_w"], packed["ln1_b"], packed["ln2_w"], packed["ln2_b"],
      packed["lnf_w"], packed["lnf_b"])


def compute_embeddings(images, captions, ep):
    """MaskedAutoEncoder embedding front-end (plain JAX: tiny Linear + gathers)."""
    n_patches = images.shape[1]
    cap_len = captions.shape[1]
    img = images @ ep["ite_w"].T + ep["ite_b"]
    img = img + ep["ipe"][:n_patches][None, :, :]           # default patch_ids = arange
    wrd = ep["wte"][captions] + ep["wpe"][:cap_len][None, :, :]
    return jnp.concatenate([img, wrd], axis=1)


@functools.partial(jax.jit, static_argnames=("n_heads", "n_layers"))
def masked_ae_forward(images, captions, embed_params, packed_encoder,
                      n_heads, n_layers):
    x = compute_embeddings(images, captions, embed_params)
    return fused_encoder(x, packed_encoder, n_heads, n_layers)


# ---------------------------------------------------------------------------
# parameter init (PyTorch nn.Linear layout) + kernel-layout packing
# ---------------------------------------------------------------------------
def init_params(key, *, n_layers, d_model, d_ff, patch_dim, vocab_size, max_len,
                dtype=jnp.float32):
    def nrm(k, shape, s):
        return (s * jax.random.normal(k, shape)).astype(dtype)

    key, *ks = jax.random.split(key, 6)
    embed = {
        "ite_w": nrm(ks[0], (d_model, patch_dim), 0.1),
        "ite_b": nrm(ks[1], (d_model,), 0.1),
        "ipe":   nrm(ks[2], (max_len, d_model), 0.5),
        "wte":   nrm(ks[3], (vocab_size, d_model), 0.5),
        "wpe":   nrm(ks[4], (max_len, d_model), 0.5),
    }

    layers = []
    for _ in range(n_layers):
        key, *ks = jax.random.split(key, 17)
        layers.append({
            "wq": nrm(ks[0], (d_model, d_model), 0.05), "bq": nrm(ks[1], (d_model,), 0.02),
            "wk": nrm(ks[2], (d_model, d_model), 0.05), "bk": nrm(ks[3], (d_model,), 0.02),
            "wv": nrm(ks[4], (d_model, d_model), 0.05), "bv": nrm(ks[5], (d_model,), 0.02),
            "wo": nrm(ks[6], (d_model, d_model), 0.05), "bo": nrm(ks[7], (d_model,), 0.02),
            "w1": nrm(ks[8], (d_ff, d_model), 0.05),    "b1": nrm(ks[9], (d_ff,), 0.02),
            "w2": nrm(ks[10], (d_model, d_ff), 0.05),   "b2": nrm(ks[11], (d_model,), 0.02),
            "ln1_w": 1.0 + nrm(ks[12], (d_model,), 0.1),
            "ln1_b": nrm(ks[13], (d_model,), 0.02),
            "ln2_w": 1.0 + nrm(ks[14], (d_model,), 0.1),
            "ln2_b": nrm(ks[15], (d_model,), 0.02),
        })
    key, kf = jax.random.split(key)
    final = {"w": 1.0 + nrm(kf, (d_model,), 0.1),
             "b": jnp.zeros((d_model,), dtype)}
    return embed, layers, final


def pack_encoder_params(layers, final, n_heads, weight_dtype=jnp.bfloat16):
    """Stack per-layer weights along a leading L axis, pre-transpose to x@W layout,
    fuse Q/K/V, fold 1/sqrt(dh) into the Q columns (in f32, before the bf16 cast),
    cast matmul weights to bf16 (biases / LN params stay f32)."""
    d_model = layers[0]["wq"].shape[0]
    dh = d_model // n_heads
    inv = 1.0 / float(dh) ** 0.5

    def stack(fn):
        return jnp.stack([fn(p) for p in layers], axis=0)

    return {
        "wqkv": stack(lambda p: jnp.concatenate(
            [p["wq"].T * inv, p["wk"].T, p["wv"].T], axis=1)).astype(weight_dtype),
        "bqkv": stack(lambda p: jnp.concatenate(
            [p["bq"] * inv, p["bk"], p["bv"]])[None, :]),
        "wo": stack(lambda p: p["wo"].T).astype(weight_dtype),
        "bo": stack(lambda p: p["bo"][None, :]),
        "w1": stack(lambda p: p["w1"].T).astype(weight_dtype),
        "b1": stack(lambda p: p["b1"][None, :]),
        "w2": stack(lambda p: p["w2"].T).astype(weight_dtype),
        "b2": stack(lambda p: p["b2"][None, :]),
        "ln1_w": stack(lambda p: p["ln1_w"][None, :]),
        "ln1_b": stack(lambda p: p["ln1_b"][None, :]),
        "ln2_w": stack(lambda p: p["ln2_w"][None, :]),
        "ln2_b": stack(lambda p: p["ln2_b"][None, :]),
        "lnf_w": final["w"][None, :],
        "lnf_b": final["b"][None, :],
    }


# ---------------------------------------------------------------------------
# pure-JAX f32 reference (mirrors the PyTorch module, eval mode, norm_first)
# ---------------------------------------------------------------------------
def ref_forward(images, captions, embed, layers, final, n_heads):
    def ln(y, w, b):
        mu = y.mean(-1, keepdims=True)
        var = ((y - mu) ** 2).mean(-1, keepdims=True)
        return (y - mu) / jnp.sqrt(var + LN_EPS) * w + b

    x = compute_embeddings(images, captions, embed)
    B, S, D = x.shape
    dh = D // n_heads
    for p in layers:
        h = ln(x, p["ln1_w"], p["ln1_b"])
        q = h @ p["wq"].T + p["bq"]
        k = h @ p["wk"].T + p["bk"]
        v = h @ p["wv"].T + p["bv"]
        q = q.reshape(B, S, n_heads, dh).transpose(0, 2, 1, 3)
        k = k.reshape(B, S, n_heads, dh).transpose(0, 2, 1, 3)
        v = v.reshape(B, S, n_heads, dh).transpose(0, 2, 1, 3)
        a = jax.nn.softmax((q @ k.transpose(0, 1, 3, 2)) / jnp.sqrt(jnp.float32(dh)),
                           axis=-1)
        o = (a @ v).transpose(0, 2, 1, 3).reshape(B, S, D)
        o = o @ p["wo"].T + p["bo"]
        x = x + o
        h2 = ln(x, p["ln2_w"], p["ln2_b"])
        ff = jax.nn.gelu(h2 @ p["w1"].T + p["b1"], approximate=False)
        ff = ff @ p["w2"].T + p["b2"]
        x = x + ff
    return ln(x, final["w"], final["b"])


# ---------------------------------------------------------------------------
if __name__ == "__main__":
    # Small config consistent with MaskedAEConfig (scaled down):
    #   in_channels=3, patch_size=4 -> patch_dim=48, n_patches=8, caption_len=8,
    #   encoder_hidden_dim=32, n_encoder_heads=4, dim_encoder_feedforward=64,
    #   n_encoder_layers=2, vocab_size=50, max_input_len=64
    B, N_PATCH, PATCH, C = 2, 8, 4, 3
    CAP_LEN, D, H, FF, L = 8, 32, 4, 64, 2
    VOCAB, MAX_LEN = 50, 64
    PATCH_DIM = C * PATCH * PATCH  # 48

    key = jax.random.PRNGKey(0)
    key, k_img, k_cap, k_par = jax.random.split(key, 4)
    images = jax.random.normal(k_img, (B, N_PATCH, PATCH_DIM), jnp.float32)
    captions = jax.random.randint(k_cap, (B, CAP_LEN), 0, VOCAB)

    embed_params, layer_params, final_params = init_params(
        k_par, n_layers=L, d_model=D, d_ff=FF, patch_dim=PATCH_DIM,
        vocab_size=VOCAB, max_len=MAX_LEN)
    packed = pack_encoder_params(layer_params, final_params, n_heads=H)

    out = masked_ae_forward(images, captions, embed_params, packed,
                            n_heads=H, n_layers=L)
    out = jax.block_until_ready(out)

    ref = ref_forward(images, captions, embed_params, layer_params, final_params, H)
    assert out.shape == (B, N_PATCH + CAP_LEN, D)
    # bf16 MXU operands in the kernel vs. an f32 reference -> loosened tolerance.
    assert jnp.allclose(out, ref, atol=2e-2, rtol=2e-2), (
        "mismatch vs reference: max abs diff "
        f"{float(jnp.max(jnp.abs(out - ref)))}")

    print("KERNEL_OK")
</pallas_src>

<mosaic_0001>
module attributes {stable_mosaic.version = 11 : i64} {
  func.func @_fused_encoder_kernel(%arg0: i32, %arg1: i32, %arg2: memref<1x16x32xf32, #tpu.memory_space<vmem>>, %arg3: memref<1x32x96xbf16, #tpu.memory_space<vmem>>, %arg4: memref<1x1x96xf32, #tpu.memory_space<vmem>>, %arg5: memref<1x32x32xbf16, #tpu.memory_space<vmem>>, %arg6: memref<1x1x32xf32, #tpu.memory_space<vmem>>, %arg7: memref<1x32x64xbf16, #tpu.memory_space<vmem>>, %arg8: memref<1x1x64xf32, #tpu.memory_space<vmem>>, %arg9: memref<1x64x32xbf16, #tpu.memory_space<vmem>>, %arg10: memref<1x1x32xf32, #tpu.memory_space<vmem>>, %arg11: memref<1x1x32xf32, #tpu.memory_space<vmem>>, %arg12: memref<1x1x32xf32, #tpu.memory_space<vmem>>, %arg13: memref<1x1x32xf32, #tpu.memory_space<vmem>>, %arg14: memref<1x1x32xf32, #tpu.memory_space<vmem>>, %arg15: memref<1x32xf32, #tpu.memory_space<vmem>>, %arg16: memref<1x32xf32, #tpu.memory_space<vmem>>, %arg17: memref<1x16x32xf32, #tpu.memory_space<vmem>>, %arg18: memref<1x16x32xf32, #tpu.memory_space<vmem>>) attributes {dimension_semantics = [#tpu.dimension_semantics<parallel>, #tpu.dimension_semantics<arbitrary>], iteration_bounds = array<i64: 2, 2>, scalar_prefetch = 0 : i64, scratch_operands = 1 : i64, tpu.core_type = #tpu.core_type<tc>, window_params = [{transform_indices = @transform_0, window_bounds = array<i64: 1, 16, 32>}, {transform_indices = @transform_1, window_bounds = array<i64: 1, 32, 96>}, {transform_indices = @transform_2, window_bounds = array<i64: 1, 1, 96>}, {transform_indices = @transform_3, window_bounds = array<i64: 1, 32, 32>}, {transform_indices = @transform_4, window_bounds = array<i64: 1, 1, 32>}, {transform_indices = @transform_5, window_bounds = array<i64: 1, 32, 64>}, {transform_indices = @transform_6, window_bounds = array<i64: 1, 1, 64>}, {transform_indices = @transform_7, window_bounds = array<i64: 1, 64, 32>}, {transform_indices = @transform_8, window_bounds = array<i64: 1, 1, 32>}, {transform_indices = @transform_9, window_bounds = array<i64: 1, 1, 32>}, {transform_indices = @transform_10, window_bounds = array<i64: 1, 1, 32>}, {transform_indices = @transform_11, window_bounds = array<i64: 1, 1, 32>}, {transform_indices = @transform_12, window_bounds = array<i64: 1, 1, 32>}, {pipeline_mode = #tpu.pipeline_mode<synchronous>, transform_indices = @transform_13, window_bounds = array<i64: 1, 32>}, {pipeline_mode = #tpu.pipeline_mode<synchronous>, transform_indices = @transform_14, window_bounds = array<i64: 1, 32>}, {transform_indices = @transform_15, window_bounds = array<i64: 1, 16, 32>}]} {
    %c0_i32 = arith.constant 0 : i32
    %0 = arith.cmpi eq, %arg1, %c0_i32 : i32
    %1 = arith.extui %0 : i1 to i32
    %c0_i32_0 = arith.constant 0 : i32
    %2 = arith.cmpi ne, %1, %c0_i32_0 : i32
    scf.if %2 {
      %c0_63 = arith.constant 0 : index
      %c0_64 = arith.constant 0 : index
      %c0_65 = arith.constant 0 : index
      %171 = vector.load %arg2[%c0_63, %c0_64, %c0_65] : memref<1x16x32xf32, #tpu.memory_space<vmem>>, vector<1x16x32xf32>
      %c0_66 = arith.constant 0 : index
      %c0_67 = arith.constant 0 : index
      %c0_68 = arith.constant 0 : index
      %172 = vector.load %arg18[%c0_66, %c0_67, %c0_68] : memref<1x16x32xf32, #tpu.memory_space<vmem>>, vector<1x16x32xf32>
      tpu.vector_store %arg18[%c0_66, %c0_67, %c0_68], %171 {strides = array<i32>} : memref<1x16x32xf32, #tpu.memory_space<vmem>>, vector<1x16x32xf32>,
    } else {
    }
    %c0 = arith.constant 0 : index
    %c0_1 = arith.constant 0 : index
    %c0_2 = arith.constant 0 : index
    %3 = vector.load %arg18[%c0, %c0_1, %c0_2] : memref<1x16x32xf32, #tpu.memory_space<vmem>>, vector<1x16x32xf32>
    %4 = vector.shape_cast %3 : vector<1x16x32xf32> to vector<16x32xf32>
    %c0_3 = arith.constant 0 : index
    %c0_4 = arith.constant 0 : index
    %c0_5 = arith.constant 0 : index
    %5 = vector.load %arg11[%c0_3, %c0_4, %c0_5] : memref<1x1x32xf32, #tpu.memory_space<vmem>>, vector<1x1x32xf32>
    %6 = vector.shape_cast %5 : vector<1x1x32xf32> to vector<1x32xf32>
    %c0_6 = arith.constant 0 : index
    %c0_7 = arith.constant 0 : index
    %c0_8 = arith.constant 0 : index
    %7 = vector.load %arg12[%c0_6, %c0_7, %c0_8] : memref<1x1x32xf32, #tpu.memory_space<vmem>>, vector<1x1x32xf32>
    %8 = vector.shape_cast %7 : vector<1x1x32xf32> to vector<1x32xf32>
    %cst = arith.constant dense<0.000000e+00> : vector<16xf32>
    %9 = vector.multi_reduction <add>, %4, %cst [1] : vector<16x32xf32> to vector<16xf32>
    %10 = vector.shape_cast %9 : vector<16xf32> to vector<16x1xf32>
    %cst_9 = arith.constant 3.200000e+01 : f32
    %11 = vector.broadcast %cst_9 : f32 to vector<16x1xf32>
    %12 = arith.divf %10, %11 : vector<16x1xf32>
    %13 = vector.broadcast %12 : vector<16x1xf32> to vector<16x32xf32>
    %14 = arith.subf %4, %13 : vector<16x32xf32>
    %15 = arith.mulf %14, %14 : vector<16x32xf32>
    %cst_10 = arith.constant dense<0.000000e+00> : vector<16xf32>
    %16 = vector.multi_reduction <add>, %15, %cst_10 [1] : vector<16x32xf32> to vector<16xf32>
    %17 = vector.shape_cast %16 : vector<16xf32> to vector<16x1xf32>
    %cst_11 = arith.constant 3.200000e+01 : f32
    %18 = vector.broadcast %cst_11 : f32 to vector<16x1xf32>
    %19 = arith.divf %17, %18 : vector<16x1xf32>
    %20 = vector.broadcast %12 : vector<16x1xf32> to vector<16x32xf32>
    %21 = arith.subf %4, %20 : vector<16x32xf32>
    %cst_12 = arith.constant 9.99999974E-6 : f32
    %22 = vector.broadcast %cst_12 : f32 to vector<16x1xf32>
    %23 = arith.addf %19, %22 : vector<16x1xf32>
    %24 = math.rsqrt %23 : vector<16x1xf32>
    %25 = vector.broadcast %24 : vector<16x1xf32> to vector<16x32xf32>
    %26 = arith.mulf %21, %25 : vector<16x32xf32>
    %27 = vector.broadcast %6 : vector<1x32xf32> to vector<16x32xf32>
    %28 = arith.mulf %26, %27 : vector<16x32xf32>
    %29 = vector.broadcast %8 : vector<1x32xf32> to vector<16x32xf32>
    %30 = arith.addf %28, %29 : vector<16x32xf32>
    %31 = arith.truncf %30 : vector<16x32xf32> to vector<16x32xbf16>
    %c0_13 = arith.constant 0 : index
    %c0_14 = arith.constant 0 : index
    %c0_15 = arith.constant 0 : index
    %32 = vector.load %arg3[%c0_13, %c0_14, %c0_15] : memref<1x32x96xbf16, #tpu.memory_space<vmem>>, vector<1x32x96xbf16>
    %33 = vector.shape_cast %32 : vector<1x32x96xbf16> to vector<32x96xbf16>
    %cst_16 = arith.constant dense<0.000000e+00> : vector<16x96xf32>
    %34 = tpu.matmul %31, %33, %cst_16 {dimension_numbers = #tpu.dot_dimension_numbers<[1], [0], [0], [1], [0, 0, 1, 1], [], []>} : vector<16x32xbf16>, vector<32x96xbf16>, vector<16x96xf32> -> vector<16x96xf32>
    %c0_17 = arith.constant 0 : index
    %c0_18 = arith.constant 0 : index
    %c0_19 = arith.constant 0 : index
    %35 = vector.load %arg4[%c0_17, %c0_18, %c0_19] : memref<1x1x96xf32, #tpu.memory_space<vmem>>, vector<1x1x96xf32>
    %36 = vector.shape_cast %35 : vector<1x1x96xf32> to vector<1x96xf32>
    %37 = vector.broadcast %36 : vector<1x96xf32> to vector<16x96xf32>
    %38 = arith.addf %34, %37 : vector<16x96xf32>
    %39 = arith.truncf %38 : vector<16x96xf32> to vector<16x96xbf16>
    %40 = vector.extract_strided_slice %39 {offsets = [0, 0], sizes = [16, 8], strides = [1, 1]} : vector<16x96xbf16> to vector<16x8xbf16>
    %41 = vector.shape_cast %40 : vector<16x8xbf16> to vector<1x16x8xbf16>
    %42 = vector.extract_strided_slice %39 {offsets = [0, 8], sizes = [16, 8], strides = [1, 1]} : vector<16x96xbf16> to vector<16x8xbf16>
    %43 = vector.shape_cast %42 : vector<16x8xbf16> to vector<1x16x8xbf16>
    %44 = vector.extract_strided_slice %39 {offsets = [0, 16], sizes = [16, 8], strides = [1, 1]} : vector<16x96xbf16> to vector<16x8xbf16>
    %45 = vector.shape_cast %44 : vector<16x8xbf16> to vector<1x16x8xbf16>
    %46 = vector.extract_strided_slice %39 {offsets = [0, 24], sizes = [16, 8], strides = [1, 1]} : vector<16x96xbf16> to vector<16x8xbf16>
    %47 = vector.shape_cast %46 : vector<16x8xbf16> to vector<1x16x8xbf16>
    %48 = vector.shape_cast %41 : vector<1x16x8xbf16> to vector<1x1x16x8xbf16>
    %49 = vector.shape_cast %43 : vector<1x16x8xbf16> to vector<1x1x16x8xbf16>
    %50 = vector.shape_cast %45 : vector<1x16x8xbf16> to vector<1x1x16x8xbf16>
    %51 = vector.shape_cast %47 : vector<1x16x8xbf16> to vector<1x1x16x8xbf16>
    %52 = tpu.concatenate %48, %49, %50, %51 in 0 : vector<1x1x16x8xbf16>, vector<1x1x16x8xbf16>, vector<1x1x16x8xbf16>, vector<1x1x16x8xbf16> -> vector<4x1x16x8xbf16>
    %53 = vector.shape_cast %52 : vector<4x1x16x8xbf16> to vector<4x16x8xbf16>
    %54 = vector.extract_strided_slice %39 {offsets = [0, 32], sizes = [16, 8], strides = [1, 1]} : vector<16x96xbf16> to vector<16x8xbf16>
    %55 = vector.shape_cast %54 : vector<16x8xbf16> to vector<1x16x8xbf16>
    %56 = vector.extract_strided_slice %39 {offsets = [0, 40], sizes = [16, 8], strides = [1, 1]} : vector<16x96xbf16> to vector<16x8xbf16>
    %57 = vector.shape_cast %56 : vector<16x8xbf16> to vector<1x16x8xbf16>
    %58 = vector.extract_strided_slice %39 {offsets = [0, 48], sizes = [16, 8], strides = [1, 1]} : vector<16x96xbf16> to vector<16x8xbf16>
    %59 = vector.shape_cast %58 : vector<16x8xbf16> to vector<1x16x8xbf16>
    %60 = vector.extract_strided_slice %39 {offsets = [0, 56], sizes = [16, 8], strides = [1, 1]} : vector<16x96xbf16> to vector<16x8xbf16>
    %61 = vector.shape_cast %60 : vector<16x8xbf16> to vector<1x16x8xbf16>
    %62 = vector.shape_cast %55 : vector<1x16x8xbf16> to vector<1x1x16x8xbf16>
    %63 = vector.shape_cast %57 : vector<1x16x8xbf16> to vector<1x1x16x8xbf16>
    %64 = vector.shape_cast %59 : vector<1x16x8xbf16> to vector<1x1x16x8xbf16>
    %65 = vector.shape_cast %61 : vector<1x16x8xbf16> to vector<1x1x16x8xbf16>
    %66 = tpu.concatenate %62, %63, %64, %65 in 0 : vector<1x1x16x8xbf16>, vector<1x1x16x8xbf16>, vector<1x1x16x8xbf16>, vector<1x1x16x8xbf16> -> vector<4x1x16x8xbf16>
    %67 = vector.shape_cast %66 : vector<4x1x16x8xbf16> to vector<4x16x8xbf16>
    %68 = vector.extract_strided_slice %39 {offsets = [0, 64], sizes = [16, 8], strides = [1, 1]} : vector<16x96xbf16> to vector<16x8xbf16>
    %69 = vector.shape_cast %68 : vector<16x8xbf16> to vector<1x16x8xbf16>
    %70 = vector.extract_strided_slice %39 {offsets = [0, 72], sizes = [16, 8], strides = [1, 1]} : vector<16x96xbf16> to vector<16x8xbf16>
    %71 = vector.shape_cast %70 : vector<16x8xbf16> to vector<1x16x8xbf16>
    %72 = vector.extract_strided_slice %39 {offsets = [0, 80], sizes = [16, 8], strides = [1, 1]} : vector<16x96xbf16> to vector<16x8xbf16>
    %73 = vector.shape_cast %72 : vector<16x8xbf16> to vector<1x16x8xbf16>
    %74 = vector.extract_strided_slice %39 {offsets = [0, 88], sizes = [16, 8], strides = [1, 1]} : vector<16x96xbf16> to vector<16x8xbf16>
    %75 = vector.shape_cast %74 : vector<16x8xbf16> to vector<1x16x8xbf16>
    %76 = vector.shape_cast %69 : vector<1x16x8xbf16> to vector<1x1x16x8xbf16>
    %77 = vector.shape_cast %71 : vector<1x16x8xbf16> to vector<1x1x16x8xbf16>
    %78 = vector.shape_cast %73 : vector<1x16x8xbf16> to vector<1x1x16x8xbf16>
    %79 = vector.shape_cast %75 : vector<1x16x8xbf16> to vector<1x1x16x8xbf16>
    %80 = tpu.concatenate %76, %77, %78, %79 in 0 : vector<1x1x16x8xbf16>, vector<1x1x16x8xbf16>, vector<1x1x16x8xbf16>, vector<1x1x16x8xbf16> -> vector<4x1x16x8xbf16>
    %81 = vector.shape_cast %80 : vector<4x1x16x8xbf16> to vector<4x16x8xbf16>
    "tpu.trace_start"() <{level = 10 : i32, message = "hqd,hkd->hqk"}> : () -> ()
    %cst_20 = arith.constant dense<0.000000e+00> : vector<4x16x16xf32>
    %82 = tpu.matmul %53, %67, %cst_20 {dimension_numbers = #tpu.dot_dimension_numbers<[2], [2], [1], [1], [0, 0, 0, 1, 1, 1], [0], [0]>} : vector<4x16x8xbf16>, vector<4x16x8xbf16>, vector<4x16x16xf32> -> vector<4x16x16xf32>
    "tpu.trace_stop"() : () -> ()
    %cst_21 = arith.constant dense<0xFF800000> : vector<4x16xf32>
    %83 = vector.multi_reduction <maximumf>, %82, %cst_21 [2] : vector<4x16x16xf32> to vector<4x16xf32>
    %84 = vector.shape_cast %83 : vector<4x16xf32> to vector<4x16x1xf32>
    %85 = vector.broadcast %84 : vector<4x16x1xf32> to vector<4x16x16xf32>
    %86 = arith.subf %82, %85 : vector<4x16x16xf32>
    %87 = math.exp %86 : vector<4x16x16xf32>
    %cst_22 = arith.constant dense<0.000000e+00> : vector<4x16xf32>
    %88 = vector.multi_reduction <add>, %87, %cst_22 [2] : vector<4x16x16xf32> to vector<4x16xf32>
    %89 = vector.shape_cast %88 : vector<4x16xf32> to vector<4x16x1xf32>
    %90 = tpu.reciprocal %89 {approx = true} : vector<4x16x1xf32> -> vector<4x16x1xf32>
    %91 = vector.broadcast %90 : vector<4x16x1xf32> to vector<4x16x16xf32>
    %92 = arith.mulf %87, %91 : vector<4x16x16xf32>
    %93 = arith.truncf %92 : vector<4x16x16xf32> to vector<4x16x16xbf16>
    "tpu.trace_start"() <{level = 10 : i32, message = "hqk,hkd->hqd"}> : () -> ()
    %cst_23 = arith.constant dense<0.000000e+00> : vector<4x16x8xf32>
    %94 = tpu.matmul %93, %81, %cst_23 {dimension_numbers = #tpu.dot_dimension_numbers<[2], [1], [1], [2], [0, 0, 0, 1, 1, 2], [0], [0]>} : vector<4x16x16xbf16>, vector<4x16x8xbf16>, vector<4x16x8xf32> -> vector<4x16x8xf32>
    "tpu.trace_stop"() : () -> ()
    %95 = arith.truncf %94 : vector<4x16x8xf32> to vector<4x16x8xbf16>
    %96 = vector.shape_cast %95 : vector<4x16x8xbf16> to vector<4x1x16x8xbf16>
    %97 = vector.extract_strided_slice %96 {offsets = [0, 0, 0, 0], sizes = [1, 1, 16, 8], strides = [1, 1, 1, 1]} : vector<4x1x16x8xbf16> to vector<1x1x16x8xbf16>
    %98 = vector.shape_cast %97 : vector<1x1x16x8xbf16> to vector<1x16x8xbf16>
    %99 = vector.extract_strided_slice %96 {offsets = [1, 0, 0, 0], sizes = [1, 1, 16, 8], strides = [1, 1, 1, 1]} : vector<4x1x16x8xbf16> to vector<1x1x16x8xbf16>
    %100 = vector.shape_cast %99 : vector<1x1x16x8xbf16> to vector<1x16x8xbf16>
    %101 = vector.extract_strided_slice %96 {offsets = [2, 0, 0, 0], sizes = [1, 1, 16, 8], strides = [1, 1, 1, 1]} : vector<4x1x16x8xbf16> to vector<1x1x16x8xbf16>
    %102 = vector.shape_cast %101 : vector<1x1x16x8xbf16> to vector<1x16x8xbf16>
    %103 = vector.extract_strided_slice %96 {offsets = [3, 0, 0, 0], sizes = [1, 1, 16, 8], strides = [1, 1, 1, 1]} : vector<4x1x16x8xbf16> to vector<1x1x16x8xbf16>
    %104 = vector.shape_cast %103 : vector<1x1x16x8xbf16> to vector<1x16x8xbf16>
    %105 = tpu.concatenate %98, %100, %102, %104 in 2 : vector<1x16x8xbf16>, vector<1x16x8xbf16>, vector<1x16x8xbf16>, vector<1x16x8xbf16> -> vector<1x16x32xbf16>
    %106 = vector.shape_cast %105 : vector<1x16x32xbf16> to vector<16x32xbf16>
    %c0_24 = arith.constant 0 : index
    %c0_25 = arith.constant 0 : index
    %c0_26 = arith.constant 0 : index
    %107 = vector.load %arg5[%c0_24, %c0_25, %c0_26] : memref<1x32x32xbf16, #tpu.memory_space<vmem>>, vector<1x32x32xbf16>
    %108 = vector.shape_cast %107 : vector<1x32x32xbf16> to vector<32x32xbf16>
    %cst_27 = arith.constant dense<0.000000e+00> : vector<16x32xf32>
    %109 = tpu.matmul %106, %108, %cst_27 {dimension_numbers = #tpu.dot_dimension_numbers<[1], [0], [0], [1], [0, 0, 1, 1], [], []>} : vector<16x32xbf16>, vector<32x32xbf16>, vector<16x32xf32> -> vector<16x32xf32>
    %c0_28 = arith.constant 0 : index
    %c0_29 = arith.constant 0 : index
    %c0_30 = arith.constant 0 : index
    %110 = vector.load %arg6[%c0_28, %c0_29, %c0_30] : memref<1x1x32xf32, #tpu.memory_space<vmem>>, vector<1x1x32xf32>
    %111 = vector.shape_cast %110 : vector<1x1x32xf32> to vector<1x32xf32>
    %112 = vector.broadcast %111 : vector<1x32xf32> to vector<16x32xf32>
    %113 = arith.addf %109, %112 : vector<16x32xf32>
    %114 = arith.addf %4, %113 : vector<16x32xf32>
    %c0_31 = arith.constant 0 : index
    %c0_32 = arith.constant 0 : index
    %c0_33 = arith.constant 0 : index
    %115 = vector.load %arg13[%c0_31, %c0_32, %c0_33] : memref<1x1x32xf32, #tpu.memory_space<vmem>>, vector<1x1x32xf32>
    %116 = vector.shape_cast %115 : vector<1x1x32xf32> to vector<1x32xf32>
    %c0_34 = arith.constant 0 : index
    %c0_35 = arith.constant 0 : index
    %c0_36 = arith.constant 0 : index
    %117 = vector.load %arg14[%c0_34, %c0_35, %c0_36] : memref<1x1x32xf32, #tpu.memory_space<vmem>>, vector<1x1x32xf32>
    %118 = vector.shape_cast %117 : vector<1x1x32xf32> to vector<1x32xf32>
    %cst_37 = arith.constant dense<0.000000e+00> : vector<16xf32>
    %119 = vector.multi_reduction <add>, %114, %cst_37 [1] : vector<16x32xf32> to vector<16xf32>
    %120 = vector.shape_cast %119 : vector<16xf32> to vector<16x1xf32>
    %cst_38 = arith.constant 3.200000e+01 : f32
    %121 = vector.broadcast %cst_38 : f32 to vector<16x1xf32>
    %122 = arith.divf %120, %121 : vector<16x1xf32>
    %123 = vector.broadcast %122 : vector<16x1xf32> to vector<16x32xf32>
    %124 = arith.subf %114, %123 : vector<16x32xf32>
    %125 = arith.mulf %124, %124 : vector<16x32xf32>
    %cst_39 = arith.constant dense<0.000000e+00> : vector<16xf32>
    %126 = vector.multi_reduction <add>, %125, %cst_39 [1] : vector<16x32xf32> to vector<16xf32>
    %127 = vector.shape_cast %126 : vector<16xf32> to vector<16x1xf32>
    %cst_40 = arith.constant 3.200000e+01 : f32
    %128 = vector.broadcast %cst_40 : f32 to vector<16x1xf32>
    %129 = arith.divf %127, %128 : vector<16x1xf32>
    %130 = vector.broadcast %122 : vector<16x1xf32> to vector<16x32xf32>
    %131 = arith.subf %114, %130 : vector<16x32xf32>
    %cst_41 = arith.constant 9.99999974E-6 : f32
    %132 = vector.broadcast %cst_41 : f32 to vector<16x1xf32>
    %133 = arith.addf %129, %132 : vector<16x1xf32>
    %134 = math.rsqrt %133 : vector<16x1xf32>
    %135 = vector.broadcast %134 : vector<16x1xf32> to vector<16x32xf32>
    %136 = arith.mulf %131, %135 : vector<16x32xf32>
    %137 = vector.broadcast %116 : vector<1x32xf32> to vector<16x32xf32>
    %138 = arith.mulf %136, %137 : vector<16x32xf32>
    %139 = vector.broadcast %118 : vector<1x32xf32> to vector<16x32xf32>
    %140 = arith.addf %138, %139 : vector<16x32xf32>
    %141 = arith.truncf %140 : vector<16x32xf32> to vector<16x32xbf16>
    %c0_42 = arith.constant 0 : index
    %c0_43 = arith.constant 0 : index
    %c0_44 = arith.constant 0 : index
    %142 = vector.load %arg7[%c0_42, %c0_43, %c0_44] : memref<1x32x64xbf16, #tpu.memory_space<vmem>>, vector<1x32x64xbf16>
    %143 = vector.shape_cast %142 : vector<1x32x64xbf16> to vector<32x64xbf16>
    %cst_45 = arith.constant dense<0.000000e+00> : vector<16x64xf32>
    %144 = tpu.matmul %141, %143, %cst_45 {dimension_numbers = #tpu.dot_dimension_numbers<[1], [0], [0], [1], [0, 0, 1, 1], [], []>} : vector<16x32xbf16>, vector<32x64xbf16>, vector<16x64xf32> -> vector<16x64xf32>
    %c0_46 = arith.constant 0 : index
    %c0_47 = arith.constant 0 : index
    %c0_48 = arith.constant 0 : index
    %145 = vector.load %arg8[%c0_46, %c0_47, %c0_48] : memref<1x1x64xf32, #tpu.memory_space<vmem>>, vector<1x1x64xf32>
    %146 = vector.shape_cast %145 : vector<1x1x64xf32> to vector<1x64xf32>
    %147 = vector.broadcast %146 : vector<1x64xf32> to vector<16x64xf32>
    %148 = arith.addf %144, %147 : vector<16x64xf32>
    %cst_49 = arith.constant 5.000000e-01 : f32
    %149 = vector.broadcast %cst_49 : f32 to vector<16x64xf32>
    %150 = arith.mulf %149, %148 : vector<16x64xf32>
    %cst_50 = arith.constant 0.707106769 : f32
    %151 = vector.broadcast %cst_50 : f32 to vector<16x64xf32>
    %152 = arith.mulf %148, %151 : vector<16x64xf32>
    %153 = math.erf %152 : vector<16x64xf32>
    %cst_51 = arith.constant 1.000000e+00 : f32
    %154 = vector.broadcast %cst_51 : f32 to vector<16x64xf32>
    %155 = arith.addf %154, %153 : vector<16x64xf32>
    %156 = arith.mulf %150, %155 : vector<16x64xf32>
    %157 = arith.truncf %156 : vector<16x64xf32> to vector<16x64xbf16>
    %c0_52 = arith.constant 0 : index
    %c0_53 = arith.constant 0 : index
    %c0_54 = arith.constant 0 : index
    %158 = vector.load %arg9[%c0_52, %c0_53, %c0_54] : memref<1x64x32xbf16, #tpu.memory_space<vmem>>, vector<1x64x32xbf16>
    %159 = vector.shape_cast %158 : vector<1x64x32xbf16> to vector<64x32xbf16>
    %cst_55 = arith.constant dense<0.000000e+00> : vector<16x32xf32>
    %160 = tpu.matmul %157, %159, %cst_55 {dimension_numbers = #tpu.dot_dimension_numbers<[1], [0], [0], [1], [0, 0, 1, 1], [], []>} : vector<16x64xbf16>, vector<64x32xbf16>, vector<16x32xf32> -> vector<16x32xf32>
    %c0_56 = arith.constant 0 : index
    %c0_57 = arith.constant 0 : index
    %c0_58 = arith.constant 0 : index
    %161 = vector.load %arg10[%c0_56, %c0_57, %c0_58] : memref<1x1x32xf32, #tpu.memory_space<vmem>>, vector<1x1x32xf32>
    %162 = vector.shape_cast %161 : vector<1x1x32xf32> to vector<1x32xf32>
    %163 = vector.broadcast %162 : vector<1x32xf32> to vector<16x32xf32>
    %164 = arith.addf %160, %163 : vector<16x32xf32>
    %165 = arith.addf %114, %164 : vector<16x32xf32>
    %166 = vector.shape_cast %165 : vector<16x32xf32> to vector<1x16x32xf32>
    %c0_59 = arith.constant 0 : index
    %c0_60 = arith.constant 0 : index
    %c0_61 = arith.constant 0 : index
    %167 = vector.load %arg18[%c0_59, %c0_60, %c0_61] : memref<1x16x32xf32, #tpu.memory_space<vmem>>, vector<1x16x32xf32>
    tpu.vector_store %arg18[%c0_59, %c0_60, %c0_61], %166 {strides = array<i32>} : memref<1x16x32xf32, #tpu.memory_space<vmem>>, vector<1x16x32xf32>,
    %c1_i32 = arith.constant 1 : i32
    %168 = arith.cmpi eq, %arg1, %c1_i32 : i32
    %169 = arith.extui %168 : i1 to i32
    %c0_i32_62 = arith.constant 0 : i32
    %170 = arith.cmpi ne, %169, %c0_i32_62 : i32
    scf.if %170 {
      %c0_63 = arith.constant 0 : index
      %c0_64 = arith.constant 0 : index
      %171 = vector.load %arg15[%c0_63, %c0_64] : memref<1x32xf32, #tpu.memory_space<vmem>>, vector<1x32xf32>
      %c0_65 = arith.constant 0 : index
      %c0_66 = arith.constant 0 : index
      %172 = vector.load %arg16[%c0_65, %c0_66] : memref<1x32xf32, #tpu.memory_space<vmem>>, vector<1x32xf32>
      %cst_67 = arith.constant dense<0.000000e+00> : vector<16xf32>
      %173 = vector.multi_reduction <add>, %165, %cst_67 [1] : vector<16x32xf32> to vector<16xf32>
      %174 = vector.shape_cast %173 : vector<16xf32> to vector<16x1xf32>
      %cst_68 = arith.constant 3.200000e+01 : f32
      %175 = vector.broadcast %cst_68 : f32 to vector<16x1xf32>
      %176 = arith.divf %174, %175 : vector<16x1xf32>
      %177 = vector.broadcast %176 : vector<16x1xf32> to vector<16x32xf32>
      %178 = arith.subf %165, %177 : vector<16x32xf32>
      %179 = arith.mulf %178, %178 : vector<16x32xf32>
      %cst_69 = arith.constant dense<0.000000e+00> : vector<16xf32>
      %180 = vector.multi_reduction <add>, %179, %cst_69 [1] : vector<16x32xf32> to vector<16xf32>
      %181 = vector.shape_cast %180 : vector<16xf32> to vector<16x1xf32>
      %cst_70 = arith.constant 3.200000e+01 : f32
      %182 = vector.broadcast %cst_70 : f32 to vector<16x1xf32>
      %183 = arith.divf %181, %182 : vector<16x1xf32>
      %184 = vector.broadcast %176 : vector<16x1xf32> to vector<16x32xf32>
      %185 = arith.subf %165, %184 : vector<16x32xf32>
      %cst_71 = arith.constant 9.99999974E-6 : f32
      %186 = vector.broadcast %cst_71 : f32 to vector<16x1xf32>
      %187 = arith.addf %183, %186 : vector<16x1xf32>
      %188 = math.rsqrt %187 : vector<16x1xf32>
      %189 = vector.broadcast %188 : vector<16x1xf32> to vector<16x32xf32>
      %190 = arith.mulf %185, %189 : vector<16x32xf32>
      %191 = vector.broadcast %171 : vector<1x32xf32> to vector<16x32xf32>
      %192 = arith.mulf %190, %191 : vector<16x32xf32>
      %193 = vector.broadcast %172 : vector<1x32xf32> to vector<16x32xf32>
      %194 = arith.addf %192, %193 : vector<16x32xf32>
      %195 = vector.shape_cast %194 : vector<16x32xf32> to vector<1x16x32xf32>
      %c0_72 = arith.constant 0 : index
      %c0_73 = arith.constant 0 : index
      %c0_74 = arith.constant 0 : index
      %196 = vector.load %arg17[%c0_72, %c0_73, %c0_74] : memref<1x16x32xf32, #tpu.memory_space<vmem>>, vector<1x16x32xf32>
      tpu.vector_store %arg17[%c0_72, %c0_73, %c0_74], %195 {strides = array<i32>} : memref<1x16x32xf32, #tpu.memory_space<vmem>>, vector<1x16x32xf32>,
    } else {
    }
    return
  }
  func.func @transform_0(%arg0: i32, %arg1: i32) -> (i32, i32, i32) {
    %c0_i32 = arith.constant 0 : i32
    %c0_i32_0 = arith.constant 0 : i32
    %c0_i32_1 = arith.constant 0 : i32
    return %arg0, %c0_i32, %c0_i32_0 : i32, i32, i32
  }
  func.func @transform_1(%arg0: i32, %arg1: i32) -> (i32, i32, i32) {
    %c0_i32 = arith.constant 0 : i32
    %c0_i32_0 = arith.constant 0 : i32
    %c0_i32_1 = arith.constant 0 : i32
    return %arg1, %c0_i32, %c0_i32_0 : i32, i32, i32
  }
  func.func @transform_2(%arg0: i32, %arg1: i32) -> (i32, i32, i32) {
    %c0_i32 = arith.constant 0 : i32
    %c0_i32_0 = arith.constant 0 : i32
    %c0_i32_1 = arith.constant 0 : i32
    return %arg1, %c0_i32, %c0_i32_0 : i32, i32, i32
  }
  func.func @transform_3(%arg0: i32, %arg1: i32) -> (i32, i32, i32) {
    %c0_i32 = arith.constant 0 : i32
    %c0_i32_0 = arith.constant 0 : i32
    %c0_i32_1 = arith.constant 0 : i32
    return %arg1, %c0_i32, %c0_i32_0 : i32, i32, i32
  }
  func.func @transform_4(%arg0: i32, %arg1: i32) -> (i32, i32, i32) {
    %c0_i32 = arith.constant 0 : i32
    %c0_i32_0 = arith.constant 0 : i32
    %c0_i32_1 = arith.constant 0 : i32
    return %arg1, %c0_i32, %c0_i32_0 : i32, i32, i32
  }
  func.func @transform_5(%arg0: i32, %arg1: i32) -> (i32, i32, i32) {
    %c0_i32 = arith.constant 0 : i32
    %c0_i32_0 = arith.constant 0 : i32
    %c0_i32_1 = arith.constant 0 : i32
    return %arg1, %c0_i32, %c0_i32_0 : i32, i32, i32
  }
  func.func @transform_6(%arg0: i32, %arg1: i32) -> (i32, i32, i32) {
    %c0_i32 = arith.constant 0 : i32
    %c0_i32_0 = arith.constant 0 : i32
    %c0_i32_1 = arith.constant 0 : i32
    return %arg1, %c0_i32, %c0_i32_0 : i32, i32, i32
  }
  func.func @transform_7(%arg0: i32, %arg1: i32) -> (i32, i32, i32) {
    %c0_i32 = arith.constant 0 : i32
    %c0_i32_0 = arith.constant 0 : i32
    %c0_i32_1 = arith.constant 0 : i32
    return %arg1, %c0_i32, %c0_i32_0 : i32, i32, i32
  }
  func.func @transform_8(%arg0: i32, %arg1: i32) -> (i32, i32, i32) {
    %c0_i32 = arith.constant 0 : i32
    %c0_i32_0 = arith.constant 0 : i32
    %c0_i32_1 = arith.constant 0 : i32
    return %arg1, %c0_i32, %c0_i32_0 : i32, i32, i32
  }
  func.func @transform_9(%arg0: i32, %arg1: i32) -> (i32, i32, i32) {
    %c0_i32 = arith.constant 0 : i32
    %c0_i32_0 = arith.constant 0 : i32
    %c0_i32_1 = arith.constant 0 : i32
    return %arg1, %c0_i32, %c0_i32_0 : i32, i32, i32
  }
  func.func @transform_10(%arg0: i32, %arg1: i32) -> (i32, i32, i32) {
    %c0_i32 = arith.constant 0 : i32
    %c0_i32_0 = arith.constant 0 : i32
    %c0_i32_1 = arith.constant 0 : i32
    return %arg1, %c0_i32, %c0_i32_0 : i32, i32, i32
  }
  func.func @transform_11(%arg0: i32, %arg1: i32) -> (i32, i32, i32) {
    %c0_i32 = arith.constant 0 : i32
    %c0_i32_0 = arith.constant 0 : i32
    %c0_i32_1 = arith.constant 0 : i32
    return %arg1, %c0_i32, %c0_i32_0 : i32, i32, i32
  }
  func.func @transform_12(%arg0: i32, %arg1: i32) -> (i32, i32, i32) {
    %c0_i32 = arith.constant 0 : i32
    %c0_i32_0 = arith.constant 0 : i32
    %c0_i32_1 = arith.constant 0 : i32
    return %arg1, %c0_i32, %c0_i32_0 : i32, i32, i32
  }
  func.func @transform_13(%arg0: i32, %arg1: i32) -> (i32, i32) {
    %c0_i32 = arith.constant 0 : i32
    %c0_i32_0 = arith.constant 0 : i32
    %c0_i32_1 = arith.constant 0 : i32
    return %c0_i32, %c0_i32_0 : i32, i32
  }
  func.func @transform_14(%arg0: i32, %arg1: i32) -> (i32, i32) {
    %c0_i32 = arith.constant 0 : i32
    %c0_i32_0 = arith.constant 0 : i32
    %c0_i32_1 = arith.constant 0 : i32
    return %c0_i32, %c0_i32_0 : i32, i32
  }
  func.func @transform_15(%arg0: i32, %arg1: i32) -> (i32, i32, i32) {
    %c0_i32 = arith.constant 0 : i32
    %c0_i32_0 = arith.constant 0 : i32
    %c0_i32_1 = arith.constant 0 : i32
    return %arg0, %c0_i32, %c0_i32_0 : i32, i32, i32
  }
}

</mosaic_0001>

<bundles_post_ra>
// kernel: masked_ae_forward.1
= control target key start
LH: loop header
LB: loop body
LE: loop exit
PB: predicated region body
PF: predicated region fallthrough
CT: control target
= control target key end

     0   :  { %s2769_s0 = inlined_call_operand.vmem [shape: f32[2,16,32], index: 0, kind: input, shape index: {}]   ;;  %s2770_s1 = inlined_call_operand.vmem [shape: bf16[2,32,96], index: 1, kind: input, shape index: {}]   ;;  %s2771_s2 = inlined_call_operand.vmem [shape: f32[2,1,96], index: 2, kind: input, shape index: {}]   ;;  %s2772_s3 = inlined_call_operand.vmem [shape: bf16[2,32,32], index: 3, kind: input, shape index: {}]   ;;  %s2773_s4 = inlined_call_operand.vmem [shape: f32[2,1,32], index: 4, kind: input, shape index: {}]   ;;  %s2774_s5 = inlined_call_operand.vmem [shape: bf16[2,32,64], index: 5, kind: input, shape index: {}]   ;;  %s2775_s6 = inlined_call_operand.vmem [shape: f32[2,1,64], index: 6, kind: input, shape index: {}]   ;;  %s2776_s7 = inlined_call_operand.vmem [shape: bf16[2,64,32], index: 7, kind: input, shape index: {}]   ;;  %s2777_s8 = inlined_call_operand.vmem [shape: f32[2,1,32], index: 8, kind: input, shape index: {}]   ;;  %s2778_s9 = inlined_call_operand.vmem [shape: f32[2,1,32], index: 9, kind: input, shape index: {}]   ;;  %s2779_s10 = inlined_call_operand.vmem [shape: f32[2,1,32], index: 10, kind: input, shape index: {}]   ;;  %s2780_s11 = inlined_call_operand.vmem [shape: f32[2,1,32], index: 11, kind: input, shape index: {}]   ;;  %s2781_s12 = inlined_call_operand.vmem [shape: f32[2,1,32], index: 12, kind: input, shape index: {}]   ;;  %s2782_s13 = inlined_call_operand.vmem [shape: f32[1,32], index: 13, kind: input, shape index: {}]   ;;  %s2783_s14 = inlined_call_operand.vmem [shape: f32[1,32], index: 14, kind: input, shape index: {}]   ;;  %s2784_s15 = inlined_call_operand.hbm [shape: f32[2,16,32], index: 15, kind: output, shape index: {}]  }
   0x1   :  { %2801 = sst [smem:[#allocation20_spill]] %s2769_s0 }
   0x2   :  { %2802 = sst [smem:[#allocation21_spill]] %s2770_s1 }
   0x3   :  { %2803 = sst [smem:[#allocation22_spill]] %s2772_s3 }
   0x4   :  { %2804 = sst [smem:[#allocation23_spill]] %s2774_s5 }
   0x5   :  { %2805 = sst [smem:[#allocation24_spill]] %s2782_s13 }
   0x6   :  { %2806 = sst [smem:[#allocation25_spill]] %s2783_s14 }
   0x7   :  { %2807 = sst [smem:[#allocation26_spill]] %s2784_s15 }
   0x8   :  { %20 = vsyncpa [#allocation4], 0 }
   0x9   :  { %22 = vsyncpa [#allocation4 + $0x1], 0  ;;  %s2369_s18 = smov 0   ;;  %s2371_s19 = smov 0  }
   0xa   :  { %s2373_s20 = smov 0   ;;  %s2375_s21 = smov 0  }
   0xb   :  { %s2377_s22 = smov 0   ;;  %s2379_s23 = smov 0  }
   0xc   :  { %s2381_s24 = smov 0   ;;  %s2383_s25 = smov 0  }
   0xd LB: > { %2808 = sst [smem:[#allocation6_spill]] %s2247_s18  ;;  %s1866_s26 = sadd.s32 4294967295, %s2275_s25   ;;  %s2275_s25 = sphi %s2383_s25, %s28_s25   ;;  %s2271_s24 = sphi %s2381_s24, %s2852_s24   ;;  %s2267_s23 = sphi %s2379_s23, %s2851_s23   ;;  %s2263_s22 = sphi %s2377_s22, %s2850_s22   ;;  %s2259_s21 = sphi %s2375_s21, %s2849_s21   ;;  %s2255_s20 = sphi %s2373_s20, %s2848_s20   ;;  %s2251_s19 = sphi %s2371_s19, %s2847_s19   ;;  %s2247_s18 = sphi %s2369_s18, %s2846_s18  }
   0xe   : > { %2809 = sst [smem:[#allocation7_spill]] %s2251_s19  ;;  %s1867_s27 = sadd.s32 4294967294, %s2275_s25  }
   0xf   : > { %2810 = sst [smem:[#allocation8_spill]] %s2255_s20  ;;  %s37_s28 = sadd.s32 1, %s2267_s23 }
  0x10   : > { %2811 = sst [smem:[#allocation9_spill]] %s2259_s21  ;;  %p38_p0 = scmp.ge.s32.totalorder %s37_s28, 2 }
  0x11   : > { %2812 = sst [smem:[#allocation10_spill]] %s2263_s22  ;;  %s40_s29 = sadd.s32 1, %s2271_s24 }
  0x12   : > { %2813 = sst [smem:[#allocation11_spill]] %s2267_s23  ;;  %p437_p1 = scmp.ne.s32.totalorder %s2255_s20, %s2251_s19 }
  0x13   : > { %2814 = sst [smem:[#allocation12_spill]] %s2271_s24  ;;  %p438_p2 = scmp.eq.s32.totalorder %s1866_s26, 3 }
  0x14   : > { %2815 = sst [smem:[#allocation13_spill]] %s2275_s25  ;;  %s2854_s28 = smov (%p38_p0, %s37_s28), 0 }
  0x15   : > { %2816 = sst [smem:[#allocation14_spill]] %s2854_s28  ;;  %s2856_s29 = smov (!%p38_p0, %s40_s29), %s2271_s24 }
  0x16   : > { %p2418_p3 = por %p438_p2, %p437_p1  ;;  %p443_p4 = scmp.ne.s32.totalorder %s2251_s19, %s2247_s18 }
  0x17   : > { %p42_p5 = scmp.ge.s32.totalorder %s2856_s29, 2  ;;  %p444_p6 = scmp.eq.s32.totalorder %s1867_s27, 3 }
  0x18   : > { %s2817_s30 = scalar_select %p2418_p3, 1, 0 }
  0x19   : > { %p1870_p7 = scmp.ge.s32.totalorder %s2275_s25, 1  ;;  %p556_p8 = scmp.lt.s32.totalorder %s2275_s25, 5 }
  0x1a   : > { %2818 = sst [smem:[#allocation15_spill]] %s2817_s30  ;;  %s2858_s29 = smov (%p42_p5, %s2856_s29), 0 }
  0x1b   : > { %2819 = sst [smem:[#allocation16_spill]] %s2858_s29  ;;  %p2428_p9 = por %p444_p6, %p443_p4 }
  0x1c   : > { %p557_p10 = pnand %p1870_p7, %p556_p8  ;;  %s424_s17 = ssub.s32 %s2271_s24, %s2858_s29 }
  0x1d   : > { %s2820_s16 = scalar_select %p2428_p9, 1, 0 }
  0x1e   : > { %s427_s26 = sadd.s32 1, %s2255_s20  ;;  %p425_p11 = scmp.eq.s32.totalorder %s424_s17, 0 }
  0x1f   : > { %2821 = sst [smem:[#allocation17_spill]] %s2820_s16  ;;  %560 = sbr.rel (%p557_p10) target bundleno = 3046 (0xbe6), region = 80 }
  0x20   : > { %s2436_s28 = scalar_select %p425_p11, %s2255_s20, %s427_s26  }
  0x22   : > { %2822 = sst [smem:[#allocation18_spill]] %s2436_s28 }
  0x26   : > { %s2790_s27 = sand.u32 1, %s2251_s19   ;;  %p648_p12 = scmp.lt.s32.totalorder %s2263_s22, 1 }
  0x27   : > { %s1871_s23 = sshll.u32 %s2790_s27, 4  ;;  %p653_p13 = scmp.lt.s32.totalorder %s2259_s21, 1 }
  0x28   : > { %s649_s18 = scalar_select %p648_p12, %s2263_s22, 1 }
  0x29   : > { %s2445_s16 = scalar_select %p653_p13, %s2259_s21, 1 }
  0x2a   : > { %s1921_s17 = sshll.u32 %s649_s18, 4  ;;  %s2823_s0 = sld [smem:[#allocation20_spill]] }
  0x2b   : > { %s1922_s27 = sshll.u32 %s2445_s16, 4  ;;  %s2824_s1 = sld [smem:[#allocation21_spill]] }
  0x2c   : > { %s2825_s3 = sld [smem:[#allocation22_spill]]  ;;  %s2827_s5 = sld [smem:[#allocation23_spill]] }
  0x2d   : > { %s1925_s15 = sshll.u32 %s2445_s16, 5  ;;  %s690_s29 = scalar_lea.vmem %s2779_s10, %s2445_s16 }
  0x2e   : > { %s696_s30 = scalar_lea.vmem %s2781_s12, %s2445_s16  ;;  %s2504_s14 = scalar_lea.vmem [#allocation3], %s1871_s23 }
  0x30   : > { %s652_s24 = scalar_lea.vmem %s2823_s0, %s1921_s17  ;;  %s687_s17 = scalar_lea.vmem %s2778_s9, %s2445_s16 }
  0x31   : > { %s2454_s25 = scalar_lea.vmem %s2824_s1, %s1922_s27  ;;  %s693_s1 = scalar_lea.vmem %s2780_s11, %s2445_s16 }
  0x32   : > { %s2463_s13 = scalar_lea.vmem %s2825_s3, %s1922_s27  ;;  %s2472_s0 = scalar_lea.vmem %s2827_s5, %s1922_s27 }
  0x33   : > { %2826 = sst [smem:[#allocation19_spill]] %s2463_s13  ;;  %s2486_s13 = scalar_lea.vmem %s2776_s7, %s1925_s15 }
  0x34   : > { %s2828_s3 = sld [smem:[#allocation9_spill]] }
  0x3a   : > { %p1882_p0 = scmp.ne.s32.totalorder %s2828_s3, 0 }
  0x3b   : > { %v702_v0 = vld [vmem:[%s652_s24] sm:$0xff] (!%p1882_p0)  ;;  %vm704_vm0 = vcmask (!%p1882_p0), 261120   ;;  %v703_v1 = vld [vmem:[%s652_s24 + $0x8] sm:$0xff] (!%p1882_p0) }
  0x3c   : > { %701 = sbr.rel (%p1882_p0) target bundleno = 67 (0x43), region = 84  ;;  %705 = vst.msk [vmem:[#allocation2] sm:$0xff] (!%p1882_p0), %vm704_vm0, %v702_v0  ;;  %706 = vst.msk [vmem:[#allocation2 + $0x8] sm:$0xff] (!%p1882_p0), %vm704_vm0, %v703_v1 }
  0x43 PF: > { %v2507_v2 = vld [vmem:[#allocation2] sm:$0xff]  ;;  %vm711_vm1 = vcmask 261120   ;;  %v2509_v3 = vld [vmem:[#allocation2 + $0x8] sm:$0xff]  ;;  %v2277_v17 = vmov 0.0   ;;  %vm2278_vm2 = vmmov 0   ;;  %s2829_s21 = scalar_lea.vmem %s2771_s2, %s2445_s16  ;;  %s2280_s18 = smov 120  }
  0x44   : > { %v712_v4 = vsel %vm711_vm1, %v2507_v2, 0.0  ;;  %v715_v5 = vsel %vm711_vm1, %v2509_v3, 0.0  ;;  %v2123_v16 = vld [vmem:[%s2454_s25] sm:$0xff]   ;;  %1957 = vmatprep.subr.bf16.mxu0 %v2277_v17  ;;  %1965 = vmatprep.subr.bf16.mxu1 %v2277_v17  ;;  %v2124_v18 = vld [vmem:[%s2454_s25 + $0x8] sm:$0xff]   ;;  %s2282_s27 = smov 96   ;;  %vm833_vm3 = vcmask 64512   ;;  %s2831_s24 = scalar_lea.vmem %s2773_s4, %s2445_s16 }
  0x45   : > { %713 = vadd.xlane.f32.xlu0 %v712_v4  ;;  %1958 = vmatpush3.bf16.msra.mxu0 %v2123_v16  ;;  %v1883_v27 = vld [vmem:[%s687_s17] ss:$0 sm:$0xff]  ;;  %s2281_s17 = smov 104   ;;  %vm1028_vm4 = vcmask 130048   ;;  %s2283_s26 = smov 64   ;;  %vm1327_vm5 = vcmask 195584  }
  0x46   : > { %1961 = vmatprep.mubr.msk.bf16.mxu0 %vm2278_vm2, %v2277_v17  ;;  %1959 = vmatprep.subr.bf16.mxu0 %v2277_v17  ;;  %v1884_v31 = vld [vmem:[%s690_s29] ss:$0 sm:$0xff]  ;;  %s2279_s29 = smov 112   ;;  %s2830_s20 = sld [smem:[#allocation19_spill]]  ;;  %vm1560_vm6 = vcmask 523264  }
  0x47   : > { %1967 = vmatprep.mubr.msk.bf16.mxu1 %vm2278_vm2, %v2277_v17  ;;  %v1885_v36 = vld [vmem:[%s2829_s21] ss:$0 sm:$0xff]  ;;  %s2284_s28 = smov 8   ;;  %s2285_s19 = smov 16  }
  0x48   : > { %s2286_s3 = smov 24   ;;  %s2832_s21 = scalar_lea.vmem %s2775_s6, %s2445_s16 }
  0x49   : > { %716 = vadd.xlane.f32.xlu0 %v715_v5  ;;  %1960 = vmatpush3.bf16.msra.mxu0 %v2124_v18 }
  0x4a   : > { %1971 = vmatprep.subr.bf16.mxu0 %v2277_v17 }
  0xd2   : > { %v714_v6 = vpop.xlane.xlu0 %713 }
  0xd3   : > { %v719_v7 = vmul.f32 0.03125, %v714_v6 }
  0xd5   : > { %v721_v8 = vsub.f32 %v2507_v2, %v719_v7 }
  0xd6   : > { %v717_v9 = vpop.xlane.xlu0 %716 }
  0xd7   : > { %v720_v10 = vmul.f32 0.03125, %v717_v9  ;;  %v723_v11 = vmul.f32 %v721_v8, %v721_v8 }
  0xd9   : > { %v722_v12 = vsub.f32 %v2509_v3, %v720_v10  ;;  %v725_v13 = vsel %vm711_vm1, %v723_v11, 0.0 }
  0xda   : > { %726 = vadd.xlane.f32.xlu1 %v725_v13 }
  0xdb   : > { %v724_v14 = vmul.f32 %v722_v12, %v722_v12 }
  0xdd   : > { %v728_v15 = vsel %vm711_vm1, %v724_v14, 0.0 }
  0xde   : > { %729 = vadd.xlane.f32.xlu1 %v728_v15 }
 0x167   : > { %v727_v19 = vpop.xlane.xlu1 %726 }
 0x168   : > { %v731_v20 = vmul.f32 0.03125, %v727_v19 }
 0x16a   : > { %v733_v21 = vadd.f32 1e-05, %v731_v20 }
 0x16b   : > { %v730_v22 = vpop.xlane.xlu1 %729 }
 0x16c   : > { %2133 = vrsqrt.f32 %v733_v21  ;;  %v732_v23 = vmul.f32 0.03125, %v730_v22 }
 0x16e   : > { %v734_v24 = vadd.f32 1e-05, %v732_v23 }
 0x170   : > { %2135 = vrsqrt.f32 %v734_v24 }
 0x176   : > { %v2134_v25 = vpop.eup %2133 }
 0x177   : > { %v737_v26 = vmul.f32 %v2134_v25, %v721_v8 }
 0x179   : > { %v745_v30 = vmul.f32 %v1883_v27, %v737_v26 }
 0x17a   : > { %v2136_v28 = vpop.eup %2135 }
 0x17b   : > { %v738_v29 = vmul.f32 %v2136_v28, %v722_v12  ;;  %v753_v33 = vadd.f32 %v1884_v31, %v745_v30 }
 0x17d   : > { %v746_v32 = vmul.f32 %v1883_v27, %v738_v29 }
 0x17f   : > { %v754_v34 = vadd.f32 %v1884_v31, %v746_v32 }
 0x181   : > { %v755_v35 = vpack.c.bf16 %v754_v34, %v753_v33 }
 0x183   : > { %1962 = vmatmul.mubr.msk.bf16.vlgmr.msra.gmra.mrb[0].mxu0 %vm711_vm1, %v755_v35 }
 0x184   : > { %1973 = vmatprep.mubr.msk.bf16.mxu0 %vm2278_vm2, %v2277_v17 }
 0x256   : > { %v816_v37 = vpop.f32.mrb[0].mxu0 }
 0x257   : > { %v1963_v38 = vpop.f32.mrb[1].mxu0  ;;  %v817_v40 = vadd.f32 %v1885_v36, %v816_v37 }
 0x258   : > { %v819_v39 = vpop.f32.mrb[2].mxu0 }
 0x259   : > { %v820_v41 = vadd.f32 %v1885_v36, %v819_v39  ;;  %v1964_v42 = vpop.f32.mrb[3].mxu0 }
 0x25b   : > { %v2547_v43 = vpack.c.bf16 %v820_v41, %v817_v40 }
 0x25d   : > { %827 = vrot.lane.b32.xlu1 %v2547_v43, %s2279_s29  ;;  %825 = vrot.lane.b32.xlu0 %v2547_v43, %s2280_s18  ;;  %s2833_s18 = scalar_lea.vmem %s2777_s8, %s2445_s16 }
 0x261   : > { %829 = vrot.lane.b32.xlu1 %v2547_v43, %s2281_s17  ;;  %s2834_s17 = sld [smem:[#allocation9_spill]] }
 0x265   : > { %831 = vrot.lane.b32.xlu1 %v2547_v43, %s2282_s27 }
 0x267   : > { %p1913_p1 = scmp.ne.s32.totalorder %s2834_s17, 1 }
 0x2cf   : > { %v2553_v44 = vpop.permute.xlu1 %827  ;;  %v2555_v45 = vpop.permute.xlu0 %825 }
 0x2d0   : > { %930 = vrot.lane.b32.xlu1 %v2553_v44, %s2282_s27  ;;  %881 = vrot.lane.b32.xlu0 %v2555_v45, %s2282_s27 }
 0x2d3   : > { %v2559_v46 = vpop.permute.xlu1 %829 }
 0x2d4   : > { %979 = vrot.lane.b32.xlu0 %v2559_v46, %s2282_s27 }
 0x2d7   : > { %v832_v47 = vpop.permute.xlu1 %831 }
 0x2d8   : > { %v838_v48 = vsel %vm833_vm3, %v832_v47, 0 }
 0x2d9   : > { %1966 = vmatpush3.bf16.xpose.msra.mxu1 %v838_v48 }
 0x2da   : > { %1977 = vmatprep.subr.bf16.mxu1 %v2277_v17 }
 0x2e0   : > { %1968 = vmatmul.mubr.msk.bf16.vlgmr.msra.gmra.mrb[0].mxu1 %vm833_vm3, %v2547_v43 }
 0x2e1   : > { %1979 = vmatprep.mubr.msk.bf16.mxu1 %vm2278_vm2, %v2277_v17 }
 0x342   : > { %v931_v49 = vpop.permute.xlu1 %930  ;;  %v882_v50 = vpop.permute.xlu0 %881 }
 0x343   : > { %v936_v51 = vsel %vm833_vm3, %v931_v49, 0  ;;  %v887_v52 = vsel %vm833_vm3, %v882_v50, 0 }
 0x344   : > { %1972 = vmatpush3.bf16.xpose.msra.mxu0 %v887_v52  ;;  %1978 = vmatpush3.bf16.xpose.msra.mxu1 %v936_v51 }
 0x345   : > { %1983 = vmatprep.subr.bf16.mxu0 %v2277_v17  ;;  %1989 = vmatprep.subr.bf16.mxu1 %v2277_v17 }
 0x346   : > { %v980_v53 = vpop.permute.xlu0 %979 }
 0x347   : > { %v985_v54 = vsel %vm833_vm3, %v980_v53, 0 }
 0x34b   : > { %1974 = vmatmul.mubr.msk.bf16.vlgmr.msra.gmra.mrb[4].mxu0 %vm833_vm3, %v2555_v45  ;;  %1980 = vmatmul.mubr.msk.bf16.vlgmr.msra.gmra.mrb[4].mxu1 %vm833_vm3, %v2553_v44 }
 0x34c   : > { %1984 = vmatpush3.bf16.xpose.msra.mxu0 %v985_v54  ;;  %1985 = vmatprep.mubr.msk.bf16.mxu0 %vm2278_vm2, %v2277_v17 }
 0x34d   : > { %1991 = vmatprep.mubr.msk.bf16.mxu1 %vm2278_vm2, %v2277_v17  ;;  %1995 = vmatprep.subr.bf16.mxu0 %v2277_v17 }
 0x353   : > { %1986 = vmatmul.mubr.msk.bf16.vlgmr.msra.gmra.mrb[8].mxu0 %vm833_vm3, %v2559_v46 }
 0x354   : > { %1997 = vmatprep.mubr.msk.bf16.mxu0 %vm2278_vm2, %v2277_v17 }
 0x3b3   : > { %v874_v55 = vpop.f32.mrb[0].mxu1 }
 0x3b4   : > { %v1969_v56 = vpop.f32.mrb[1].mxu1  ;;  %v1029_v57 = vsel %vm1028_vm4, %v874_v55, -inf }
 0x3b5   : > { %1030 = vmax.xlane.f32.xlu1 %v1029_v57  ;;  %v877_v58 = vpop.f32.mrb[2].mxu1 }
 0x3b6   : > { %v1970_v59 = vpop.f32.mrb[3].mxu1  ;;  %v1032_v60 = vsel %vm1028_vm4, %v877_v58, -inf }
 0x3b7   : > { %1033 = vmax.xlane.f32.xlu0 %v1032_v60 }
 0x41e   : > { %v923_v61 = vpop.f32.mrb[4].mxu0  ;;  %v972_v62 = vpop.f32.mrb[4].mxu1 }
 0x41f   : > { %v1975_v63 = vpop.f32.mrb[5].mxu0  ;;  %v1981_v0 = vpop.f32.mrb[5].mxu1  ;;  %v1041_v1 = vsel %vm1028_vm4, %v972_v62, -inf  ;;  %v1035_v4 = vsel %vm1028_vm4, %v923_v61, -inf }
 0x420   : > { %1042 = vmax.xlane.f32.xlu1 %v1041_v1  ;;  %v975_v5 = vpop.f32.mrb[6].mxu1  ;;  %1036 = vmax.xlane.f32.xlu0 %v1035_v4  ;;  %v926_v6 = vpop.f32.mrb[6].mxu0 }
 0x421   : > { %v1976_v7 = vpop.f32.mrb[7].mxu0  ;;  %v1982_v8 = vpop.f32.mrb[7].mxu1  ;;  %v1038_v9 = vsel %vm1028_vm4, %v926_v6, -inf  ;;  %v1044_v12 = vsel %vm1028_vm4, %v975_v5, -inf }
 0x424   : > { %1039 = vmax.xlane.f32.xlu0 %v1038_v9 }
 0x426   : > { %v1021_v10 = vpop.f32.mrb[8].mxu0 }
 0x427   : > { %v1987_v11 = vpop.f32.mrb[9].mxu0  ;;  %v1047_v13 = vsel %vm1028_vm4, %v1021_v10, -inf }
 0x428   : > { %1045 = vmax.xlane.f32.xlu0 %v1044_v12  ;;  %1048 = vmax.xlane.f32.xlu1 %v1047_v13  ;;  %v1024_v14 = vpop.f32.mrb[10].mxu0 }
 0x429   : > { %v1988_v15 = vpop.f32.mrb[11].mxu0  ;;  %v1050_v16 = vsel %vm1028_vm4, %v1024_v14, -inf }
 0x42c   : > { %1051 = vmax.xlane.f32.xlu0 %v1050_v16 }
 0x439   : > { %1121 = vrot.lane.b32.xlu1 %v2547_v43, %s2283_s26 }
 0x442   : > { %v1031_v18 = vpop.xlane.xlu1 %1030 }
 0x443   : > { %v1053_v21 = vsub.f32 %v874_v55, %v1031_v18 }
 0x444   : > { %v1034_v19 = vpop.xlane.xlu0 %1033 }
 0x445   : > { %v1054_v20 = vsub.f32 %v877_v58, %v1034_v19  ;;  %v1061_v23 = vmul.f32 1.442695, %v1053_v21 }
 0x447   : > { %v1063_v22 = vmul.f32 1.442695, %v1054_v20 }
 0x449   : > { %2137 = vpow2.f32 %v1063_v22 }
 0x44a   : > { %2139 = vpow2.f32 %v1061_v23 }
 0x453   : > { %v2138_v24 = vpop.eup %2137 }
 0x454   : > { %v1080_v25 = vsel %vm1028_vm4, %v2138_v24, 0.0  ;;  %v2140_v26 = vpop.eup %2139 }
 0x455   : > { %1081 = vadd.xlane.f32.xlu0 %v1080_v25  ;;  %v1077_v27 = vsel %vm1028_vm4, %v2140_v26, 0.0 }
 0x45d   : > { %1078 = vadd.xlane.f32.xlu1 %v1077_v27 }
 0x4ad   : > { %v1043_v28 = vpop.xlane.xlu1 %1042  ;;  %v1037_v29 = vpop.xlane.xlu0 %1036 }
 0x4ae   : > { %v1057_v30 = vsub.f32 %v972_v62, %v1043_v28  ;;  %v1055_v31 = vsub.f32 %v923_v61, %v1037_v29 }
 0x4b0   : > { %v1065_v32 = vmul.f32 1.442695, %v1055_v31  ;;  %v1069_v33 = vmul.f32 1.442695, %v1057_v30 }
 0x4b1   : > { %v1040_v34 = vpop.xlane.xlu0 %1039 }
 0x4b2   : > { %v1056_v35 = vsub.f32 %v926_v6, %v1040_v34  ;;  %2141 = vpow2.f32 %v1065_v32  ;;  %v2125_v34 = vld [vmem:[%s2830_s20] sm:$0xff]  }
 0x4b3   : > { %2143 = vpow2.f32 %v1069_v33 }
 0x4b4   : > { %v1067_v36 = vmul.f32 1.442695, %v1056_v35  ;;  %v2126_v35 = vld [vmem:[%s2830_s20 + $0x8] sm:$0xff]  }
 0x4b5   : > { %v1046_v37 = vpop.xlane.xlu0 %1045  ;;  %v1049_v38 = vpop.xlane.xlu1 %1048 }
 0x4b6   : > { %2145 = vpow2.f32 %v1067_v36  ;;  %v1058_v39 = vsub.f32 %v975_v5, %v1046_v37  ;;  %v1059_v40 = vsub.f32 %v1021_v10, %v1049_v38 }
 0x4b8   : > { %v1071_v41 = vmul.f32 1.442695, %v1058_v39  ;;  %v1073_v42 = vmul.f32 1.442695, %v1059_v40 }
 0x4b9   : > { %v1122_v43 = vpop.permute.xlu1 %1121  ;;  %v1052_v47 = vpop.xlane.xlu0 %1051 }
 0x4ba   : > { %2147 = vpow2.f32 %v1071_v41  ;;  %v1060_v48 = vsub.f32 %v1024_v14, %v1052_v47  ;;  %1990 = vmatpush3.bf16.msra.mxu1 %v1122_v43 }
 0x4bb   : > { %2149 = vpow2.f32 %v1073_v42  ;;  %2001 = vmatprep.subr.bf16.mxu1 %v2277_v17 }
 0x4bc   : > { %v1075_v49 = vmul.f32 1.442695, %v1060_v48  ;;  %v2142_v50 = vpop.eup %2141 }
 0x4bd   : > { %v1083_v51 = vsel %vm1028_vm4, %v2142_v50, 0.0  ;;  %v2144_v52 = vpop.eup %2143 }
 0x4be   : > { %2151 = vpow2.f32 %v1075_v49  ;;  %1084 = vadd.xlane.f32.xlu1 %v1083_v51  ;;  %v1089_v55 = vsel %vm1028_vm4, %v2144_v52, 0.0 }
 0x4c0   : > { %v2146_v53 = vpop.eup %2145 }
 0x4c1   : > { %v1086_v54 = vsel %vm1028_vm4, %v2146_v53, 0.0 }
 0x4c2   : > { %1087 = vadd.xlane.f32.xlu0 %v1086_v54  ;;  %1090 = vadd.xlane.f32.xlu1 %v1089_v55 }
 0x4c4   : > { %v2148_v56 = vpop.eup %2147 }
 0x4c5   : > { %v2150_v57 = vpop.eup %2149  ;;  %v1092_v58 = vsel %vm1028_vm4, %v2148_v56, 0.0 }
 0x4c6   : > { %v1095_v59 = vsel %vm1028_vm4, %v2150_v57, 0.0  ;;  %1093 = vadd.xlane.f32.xlu0 %v1092_v58 }
 0x4c7   : > { %1096 = vadd.xlane.f32.xlu1 %v1095_v59 }
 0x4c8   : > { %v2152_v60 = vpop.eup %2151 }
 0x4c9   : > { %v1098_v61 = vsel %vm1028_vm4, %v2152_v60, 0.0 }
 0x4ca   : > { %1099 = vadd.xlane.f32.xlu0 %v1098_v61 }
 0x4d8   : > { %1215 = vrot.lane.b32.xlu1 %v2553_v44, %s2283_s26 }
 0x4dc   : > { %1262 = vrot.lane.b32.xlu1 %v2559_v46, %s2283_s26 }
 0x4e0   : > { %1168 = vrot.lane.b32.xlu0 %v2555_v45, %s2283_s26  ;;  %s2835_s26 = sld [smem:[#allocation24_spill]] (!%p1913_p1) }
 0x4e2   : > { %v1082_v62 = vpop.xlane.xlu0 %1081 }
 0x4e3   : > { %2153 = vrcp.f32 %v1082_v62 }
 0x4ea   : > { %v1079_v63 = vpop.xlane.xlu1 %1078 }
 0x4eb   : > { %2155 = vrcp.f32 %v1079_v63 }
 0x4ed   : > { %v2154_v0 = vpop.eup %2153 }
 0x4ee   : > { %v1110_v4 = vmul.f32 %v2154_v0, %v2138_v24 }
 0x4f5   : > { %v2156_v1 = vpop.eup %2155 }
 0x4f6   : > { %v1109_v5 = vmul.f32 %v2156_v1, %v2140_v26 }
 0x4f8   : > { %v1117_v6 = vpack.c.bf16 %v1110_v4, %v1109_v5 }
 0x4fa   : > { %1992 = vmatmul.mubr.msk.bf16.vlgmr.msra.gmra.mrb[8].mxu1 %vm1028_vm4, %v1117_v6 }
 0x4fb   : > { %2003 = vmatprep.mubr.msk.bf16.mxu1 %vm2278_vm2, %v2277_v17 }
 0x54b   : > { %v1085_v44 = vpop.xlane.xlu1 %1084 }
 0x54c   : > { %2157 = vrcp.f32 %v1085_v44 }
 0x54f   : > { %v1088_v46 = vpop.xlane.xlu0 %1087  ;;  %v1091_v7 = vpop.xlane.xlu1 %1090 }
 0x550   : > { %2159 = vrcp.f32 %v1088_v46 }
 0x551   : > { %2161 = vrcp.f32 %v1091_v7 }
 0x553   : > { %v1094_v45 = vpop.xlane.xlu0 %1093 }
 0x554   : > { %v1097_v8 = vpop.xlane.xlu1 %1096  ;;  %2163 = vrcp.f32 %v1094_v45 }
 0x555   : > { %2165 = vrcp.f32 %v1097_v8 }
 0x556   : > { %v2158_v10 = vpop.eup %2157 }
 0x557   : > { %v1100_v9 = vpop.xlane.xlu0 %1099  ;;  %v1111_v13 = vmul.f32 %v2158_v10, %v2142_v50 }
 0x558   : > { %v1216_v11 = vpop.permute.xlu1 %1215  ;;  %2167 = vrcp.f32 %v1100_v9 }
 0x559   : > { %2002 = vmatpush3.bf16.msra.mxu1 %v1216_v11 }
 0x55a   : > { %v2160_v12 = vpop.eup %2159  ;;  %2013 = vmatprep.subr.bf16.mxu1 %v2277_v17 }
 0x55b   : > { %v1112_v14 = vmul.f32 %v2160_v12, %v2146_v53  ;;  %v1169_v15 = vpop.permute.xlu0 %1168  ;;  %v2162_v16 = vpop.eup %2161 }
 0x55c   : > { %1996 = vmatpush3.bf16.msra.mxu0 %v1169_v15  ;;  %v1113_v20 = vmul.f32 %v2162_v16, %v2144_v52  ;;  %v1263_v22 = vpop.permute.xlu1 %1262  ;;  %v2128_v15 = vld [vmem:[%s2472_s0 + $0x8] sm:$0xff]  }
 0x55d   : > { %v1118_v18 = vpack.c.bf16 %v1112_v14, %v1111_v13  ;;  %2007 = vmatprep.subr.bf16.mxu0 %v2277_v17  ;;  %v2127_v14 = vld [vmem:[%s2472_s0] sm:$0xff]  }
 0x55e   : > { %v2164_v19 = vpop.eup %2163 }
 0x55f   : > { %v1114_v21 = vmul.f32 %v2164_v19, %v2148_v56  ;;  %1998 = vmatmul.mubr.msk.bf16.vlgmr.msra.gmra.mrb[12].mxu0 %vm1028_vm4, %v1118_v18  ;;  %v2166_v23 = vpop.eup %2165 }
 0x560   : > { %2008 = vmatpush3.bf16.msra.mxu0 %v1263_v22  ;;  %2009 = vmatprep.mubr.msk.bf16.mxu0 %vm2278_vm2, %v2277_v17  ;;  %v1115_v26 = vmul.f32 %v2166_v23, %v2150_v57 }
 0x561   : > { %v1119_v24 = vpack.c.bf16 %v1114_v21, %v1113_v20  ;;  %2021 = vmatprep.subr.bf16.mxu0 %v2277_v17 }
 0x562   : > { %v2168_v25 = vpop.eup %2167 }
 0x563   : > { %v1116_v27 = vmul.f32 %v2168_v25, %v2152_v60  ;;  %2004 = vmatmul.mubr.msk.bf16.vlgmr.msra.gmra.mrb[12].mxu1 %vm1028_vm4, %v1119_v24  ;;  %v1897_v60 = vld [vmem:[%s2831_s24] ss:$0 sm:$0xff] }
 0x564   : > { %2017 = vmatprep.mubr.msk.bf16.mxu1 %vm2278_vm2, %v2277_v17  ;;  %2014 = vmatpush3.bf16.msra.mxu1 %v2125_v34  ;;  %v1901_v25 = vld [vmem:[%s693_s1] ss:$0 sm:$0xff] }
 0x565   : > { %v1120_v28 = vpack.c.bf16 %v1116_v27, %v1115_v26  ;;  %2015 = vmatprep.subr.bf16.mxu1 %v2277_v17  ;;  %v2129_v34 = vld [vmem:[%s2486_s13] sm:$0xff]  }
 0x567   : > { %2010 = vmatmul.mubr.msk.bf16.vlgmr.msra.gmra.mrb[16].mxu0 %vm1028_vm4, %v1120_v28 }
 0x568   : > { %2025 = vmatprep.mubr.msk.bf16.mxu0 %vm2278_vm2, %v2277_v17  ;;  %2016 = vmatpush3.bf16.msra.mxu1 %v2126_v35  ;;  %v2130_v35 = vld [vmem:[%s2486_s13 + $0x8] sm:$0xff]  }
 0x569   : > { %2029 = vmatprep.subr.bf16.mxu1 %v2277_v17  ;;  %2022 = vmatpush3.bf16.msra.mxu0 %v2127_v14 }
 0x56a   : > { %2023 = vmatprep.subr.bf16.mxu0 %v2277_v17 }
 0x56d   : > { %2024 = vmatpush3.bf16.msra.mxu0 %v2128_v15 }
 0x5cd   : > { %v1161_v29 = vpop.f32.mrb[8].mxu1 }
 0x5ce   : > { %v1993_v30 = vpop.f32.mrb[9].mxu1 }
 0x5cf   : > { %v1164_v31 = vpop.f32.mrb[10].mxu1 }
 0x5d0   : > { %v1309_v32 = vpack.c.bf16 %v1164_v31, %v1161_v29  ;;  %v1994_v33 = vpop.f32.mrb[11].mxu1  ;;  %v1902_v29 = vld [vmem:[%s696_s30] ss:$0 sm:$0xff] }
 0x632   : > { %v1208_v36 = vpop.f32.mrb[12].mxu0 }
 0x633   : > { %v1999_v37 = vpop.f32.mrb[13].mxu0 }
 0x634   : > { %v1211_v38 = vpop.f32.mrb[14].mxu0  ;;  %v2132_v37 = vld [vmem:[%s2486_s13 + $0x18] sm:$0xff]  }
 0x635   : > { %v1310_v39 = vpack.c.bf16 %v1211_v38, %v1208_v36  ;;  %v2000_v40 = vpop.f32.mrb[15].mxu0  ;;  %v2131_v36 = vld [vmem:[%s2486_s13 + $0x10] sm:$0xff]   ;;  %v1903_v38 = vld [vmem:[%s2832_s21] ss:$0 sm:$0xff] }
 0x636   : > { %v1255_v41 = vpop.f32.mrb[12].mxu1 }
 0x637   : > { %v2005_v42 = vpop.f32.mrb[13].mxu1  ;;  %1314 = vrot.lane.b32.xlu1 %v1310_v39, %s2284_s28 }
 0x638   : > { %v1258_v43 = vpop.f32.mrb[14].mxu1 }
 0x639   : > { %v1311_v47 = vpack.c.bf16 %v1258_v43, %v1255_v41  ;;  %v2006_v48 = vpop.f32.mrb[15].mxu1 }
 0x63a   : > { %v1302_v49 = vpop.f32.mrb[16].mxu0 }
 0x63b   : > { %1317 = vrot.lane.b32.xlu0 %v1311_v47, %s2285_s19  ;;  %v2011_v50 = vpop.f32.mrb[17].mxu0 }
 0x63c   : > { %v1305_v51 = vpop.f32.mrb[18].mxu0 }
 0x63d   : > { %v1312_v52 = vpack.c.bf16 %v1305_v51, %v1302_v49  ;;  %v2012_v53 = vpop.f32.mrb[19].mxu0 }
 0x63f   : > { %1320 = vrot.lane.b32.xlu1 %v1312_v52, %s2286_s3  ;;  %s2836_s3 = sld [smem:[#allocation25_spill]] (!%p1913_p1) }
 0x6a9   : > { %v1315_v54 = vpop.permute.xlu1 %1314 }
 0x6aa   : > { %v1324_v56 = vsel %vm833_vm3, %v1309_v32, %v1315_v54 }
 0x6ad   : > { %v1318_v55 = vpop.permute.xlu0 %1317 }
 0x6ae   : > { %v1326_v57 = vsel %vm1028_vm4, %v1324_v56, %v1318_v55 }
 0x6b1   : > { %v1321_v58 = vpop.permute.xlu1 %1320 }
 0x6b2   : > { %v1329_v59 = vsel %vm1327_vm5, %v1326_v57, %v1321_v58  ;;  %v1907_v58 = vld [vmem:[%s2833_s18] ss:$0 sm:$0xff] }
 0x6b3   : > { %2018 = vmatmul.mubr.msk.bf16.vlgmr.msra.gmra.mrb[16].mxu1 %vm711_vm1, %v1329_v59 }
 0x6b4   : > { %2037 = vmatprep.mubr.msk.bf16.mxu1 %vm2278_vm2, %v2277_v17  ;;  %2030 = vmatpush3.bf16.msra.mxu1 %v2129_v34 }
 0x6b5   : > { %2031 = vmatprep.subr.bf16.mxu1 %v2277_v17 }
 0x6b8   : > { %2032 = vmatpush3.bf16.msra.mxu1 %v2130_v35 }
 0x6b9   : > { %2033 = vmatprep.subr.bf16.mxu1 %v2277_v17 }
 0x6bc   : > { %2034 = vmatpush3.bf16.msra.mxu1 %v2131_v36 }
 0x6bd   : > { %2035 = vmatprep.subr.bf16.mxu1 %v2277_v17 }
 0x6c0   : > { %2036 = vmatpush3.bf16.msra.mxu1 %v2132_v37 }
 0x786   : > { %v1389_v61 = vpop.f32.mrb[16].mxu1 }
 0x787   : > { %v1390_v62 = vadd.f32 %v1897_v60, %v1389_v61  ;;  %v2019_v63 = vpop.f32.mrb[17].mxu1 }
 0x788   : > { %v1392_v0 = vpop.f32.mrb[18].mxu1 }
 0x789   : > { %v2642_v1 = vadd.f32 %v1390_v62, %v2507_v2  ;;  %v1393_v4 = vadd.f32 %v1897_v60, %v1392_v0  ;;  %v2020_v5 = vpop.f32.mrb[19].mxu1 }
 0x78b   : > { %v2645_v6 = vadd.f32 %v1393_v4, %v2509_v3  ;;  %v1400_v44 = vsel %vm711_vm1, %v2642_v1, 0.0 }
 0x78c   : > { %1401 = vadd.xlane.f32.xlu0 %v1400_v44 }
 0x78d   : > { %v1403_v46 = vsel %vm711_vm1, %v2645_v6, 0.0 }
 0x78e   : > { %1404 = vadd.xlane.f32.xlu1 %v1403_v46 }
 0x819   : > { %v1402_v7 = vpop.xlane.xlu0 %1401 }
 0x81a   : > { %v1406_v45 = vmul.f32 0.03125, %v1402_v7 }
 0x81b   : > { %v1405_v8 = vpop.xlane.xlu1 %1404 }
 0x81c   : > { %v1408_v2 = vsub.f32 %v2642_v1, %v1406_v45  ;;  %v1407_v9 = vmul.f32 0.03125, %v1405_v8 }
 0x81e   : > { %v1409_v10 = vsub.f32 %v2645_v6, %v1407_v9  ;;  %v1410_v3 = vmul.f32 %v1408_v2, %v1408_v2 }
 0x820   : > { %v1412_v11 = vsel %vm711_vm1, %v1410_v3, 0.0  ;;  %v1411_v12 = vmul.f32 %v1409_v10, %v1409_v10 }
 0x821   : > { %1413 = vadd.xlane.f32.xlu0 %v1412_v11 }
 0x822   : > { %v1415_v13 = vsel %vm711_vm1, %v1411_v12, 0.0 }
 0x825   : > { %1416 = vadd.xlane.f32.xlu0 %v1415_v13 }
 0x8ae   : > { %v1414_v16 = vpop.xlane.xlu0 %1413 }
 0x8af   : > { %v1418_v18 = vmul.f32 0.03125, %v1414_v16 }
 0x8b1   : > { %v1420_v19 = vadd.f32 1e-05, %v1418_v18 }
 0x8b2   : > { %v1417_v20 = vpop.xlane.xlu0 %1416 }
 0x8b3   : > { %2169 = vrsqrt.f32 %v1420_v19  ;;  %v1419_v21 = vmul.f32 0.03125, %v1417_v20  ;;  %v1914_v20 = vld [vmem:[%s2835_s26] ss:$0 sm:$0xff] (!%p1913_p1) }
 0x8b5   : > { %v1421_v22 = vadd.f32 1e-05, %v1419_v21 }
 0x8b7   : > { %2171 = vrsqrt.f32 %v1421_v22  ;;  %v1915_v22 = vld [vmem:[%s2836_s3] ss:$0 sm:$0xff] (!%p1913_p1) }
 0x8bd   : > { %v2170_v23 = vpop.eup %2169 }
 0x8be   : > { %v1424_v24 = vmul.f32 %v2170_v23, %v1408_v2 }
 0x8c0   : > { %v1432_v27 = vmul.f32 %v1901_v25, %v1424_v24 }
 0x8c1   : > { %v2172_v26 = vpop.eup %2171 }
 0x8c2   : > { %v1425_v28 = vmul.f32 %v2172_v26, %v1409_v10  ;;  %v1440_v31 = vadd.f32 %v1902_v29, %v1432_v27 }
 0x8c4   : > { %v1433_v30 = vmul.f32 %v1901_v25, %v1425_v28 }
 0x8c6   : > { %v1441_v32 = vadd.f32 %v1902_v29, %v1433_v30 }
 0x8c8   : > { %v1442_v33 = vpack.c.bf16 %v1441_v32, %v1440_v31 }
 0x8ca   : > { %2026 = vmatmul.mubr.msk.bf16.vlgmr.msra.gmra.mrb[20].mxu0 %vm711_vm1, %v1442_v33 }
 0x99d   : > { %v1503_v39 = vpop.f32.mrb[20].mxu0 }
 0x99e   : > { %v1504_v40 = vadd.f32 %v1903_v38, %v1503_v39  ;;  %v2027_v41 = vpop.f32.mrb[21].mxu0 }
 0x99f   : > { %v1506_v42 = vpop.f32.mrb[22].mxu0 }
 0x9a0   : > { %v1512_v43 = vmul.f32 0.70710677, %v1504_v40  ;;  %v1507_v47 = vadd.f32 %v1903_v38, %v1506_v42  ;;  %v2028_v48 = vpop.f32.mrb[23].mxu0  ;;  %v1510_v52 = vmul.f32 0.5, %v1504_v40 }
 0x9a2   : > { %2173 = verf.f32 %v1512_v43  ;;  %v1513_v49 = vmul.f32 0.70710677, %v1507_v47  ;;  %v1511_v53 = vmul.f32 0.5, %v1507_v47 }
 0x9a4   : > { %2175 = verf.f32 %v1513_v49 }
 0x9ac   : > { %v2174_v50 = vpop.eup %2173 }
 0x9ad   : > { %v1516_v17 = vadd.f32 1.0, %v2174_v50 }
 0x9ae   : > { %v2176_v51 = vpop.eup %2175 }
 0x9af   : > { %v1517_v54 = vadd.f32 1.0, %v2176_v51  ;;  %v1518_v55 = vmul.f32 %v1516_v17, %v1510_v52 }
 0x9b1   : > { %v1519_v56 = vmul.f32 %v1517_v54, %v1511_v53 }
 0x9b3   : > { %v1520_v57 = vpack.c.bf16 %v1519_v56, %v1518_v55 }
 0x9b5   : > { %2038 = vmatmul.mubr.msk.bf16.vlgmr.msra.gmra.mrb[20].mxu1 %vm1560_vm6, %v1520_v57 }
 0xa88   : > { %v1598_v59 = vpop.f32.mrb[20].mxu1 }
 0xa89   : > { %v1599_v60 = vadd.f32 %v1907_v58, %v1598_v59  ;;  %v2039_v61 = vpop.f32.mrb[21].mxu1  ;;  %1612 = sbr.rel (%p1913_p1) target bundleno = 3019 (0xbcb), region = 88 }
 0xa8a   : > { %v1601_v62 = vpop.f32.mrb[22].mxu1 }
 0xa8b   : > { %v1605_v63 = vadd.f32 %v1599_v60, %v2642_v1  ;;  %v1602_v0 = vadd.f32 %v1907_v58, %v1601_v62  ;;  %v2040_v4 = vpop.f32.mrb[23].mxu1 }
 0xa8d   : > { %1607 = vst.msk [vmem:[#allocation2] sm:$0xff] %vm711_vm1, %v1605_v63  ;;  %v1606_v5 = vadd.f32 %v1602_v0, %v2645_v6  ;;  %v1615_v44 = vsel (!%p1913_p1), %vm711_vm1, %v1605_v63, 0.0 }
 0xa8e   : > { %1616 = vadd.xlane.f32.xlu0 (!%p1913_p1), %v1615_v44 }
 0xa8f   : > { %1608 = vst.msk [vmem:[#allocation2 + $0x8] sm:$0xff] %vm711_vm1, %v1606_v5  ;;  %v1618_v46 = vsel (!%p1913_p1), %vm711_vm1, %v1606_v5, 0.0 }
 0xa92   : > { %1619 = vadd.xlane.f32.xlu0 %v1618_v46 }
 0xb1b   : > { %v1617_v7 = vpop.xlane.xlu0 %1616 }
 0xb1c   : > { %v1621_v45 = vmul.f32 0.03125, %v1617_v7 }
 0xb1e   : > { %v1623_v1 = vsub.f32 %v1605_v63, %v1621_v45 }
 0xb1f   : > { %v1620_v8 = vpop.xlane.xlu0 %1619 }
 0xb20   : > { %v1622_v2 = vmul.f32 0.03125, %v1620_v8  ;;  %v1625_v9 = vmul.f32 %v1623_v1, %v1623_v1 }
 0xb22   : > { %v1624_v10 = vsub.f32 %v1606_v5, %v1622_v2  ;;  %v1627_v6 = vsel %vm711_vm1, %v1625_v9, 0.0 }
 0xb23   : > { %1628 = vadd.xlane.f32.xlu1 %v1627_v6 }
 0xb24   : > { %v1626_v3 = vmul.f32 %v1624_v10, %v1624_v10 }
 0xb26   : > { %v1630_v11 = vsel %vm711_vm1, %v1626_v3, 0.0 }
 0xb27   : > { %1631 = vadd.xlane.f32.xlu1 %v1630_v11 }
 0xbb0   : > { %v1629_v12 = vpop.xlane.xlu1 %1628 }
 0xbb1   : > { %v1633_v13 = vmul.f32 0.03125, %v1629_v12 }
 0xbb3   : > { %v1635_v14 = vadd.f32 1e-05, %v1633_v13 }
 0xbb4   : > { %v1632_v15 = vpop.xlane.xlu1 %1631 }
 0xbb5   : > { %2177 = vrsqrt.f32 %v1635_v14  ;;  %v1634_v16 = vmul.f32 0.03125, %v1632_v15 }
 0xbb7   : > { %v1636_v18 = vadd.f32 1e-05, %v1634_v16 }
 0xbb9   : > { %2179 = vrsqrt.f32 %v1636_v18 }
 0xbbf   : > { %v2178_v19 = vpop.eup %2177 }
 0xbc0   : > { %v1639_v21 = vmul.f32 %v2178_v19, %v1623_v1 }
 0xbc2   : > { %v1647_v23 = vmul.f32 %v1914_v20, %v1639_v21 }
 0xbc3   : > { %v2180_v24 = vpop.eup %2179 }
 0xbc4   : > { %v1655_v25 = vadd.f32 %v1915_v22, %v1647_v23  ;;  %v1640_v26 = vmul.f32 %v2180_v24, %v1624_v10 }
 0xbc6   : > { %1657 = vst.msk [vmem:[%s2504_s14] sm:$0xff] %vm711_vm1, %v1655_v25  ;;  %v1648_v27 = vmul.f32 %v1914_v20, %v1640_v26 }
 0xbc8   : > { %v1656_v28 = vadd.f32 %v1915_v22, %v1648_v27 }
 0xbca   : > { %1658 = vst.msk [vmem:[%s2504_s14 + $0x8] sm:$0xff] %vm711_vm1, %v1656_v28 }
 0xbcb PF: > { %s2837_s5 = sld [smem:[#allocation10_spill]]  ;;  %s2838_s23 = sld [smem:[#allocation7_spill]] }
 0xbcc   : > { %s2840_s22 = sld [smem:[#allocation26_spill]]  ;;  %s1673_s21 = sshll.u32 %s2504_s14, 4  ;;  %s2712_s21 = int_to_ptr.vmem [resolvable:$true] %s1673_s21 }
 0xbcd   : > { %s2181_s18 = scalar_lea.vmem %s2712_s21, 256  ;;  %s2287_s17 = smov [#allocation3]  }
 0xbce   : > { %p2182_p2 = scmp.ne.s32.totalorder %s2712_s21, %s2181_s18  ;;  %s2185_s16 = sshll.u32 %s2287_s17, 4  ;;  %s2186_s16 = int_to_ptr.vmem [resolvable:$false] %s2185_s16 }
 0xbcf   : > { %s2187_s27 = scalar_lea.vmem %s2186_s16, 512  ;;  %p2188_p6 = scmp.lt.s32.totalorder %s2712_s21, %s2186_s16 }
 0xbd0   : > { %p2183_p4 = pnand %p2182_p2, %p2418_p3  ;;  %p2189_p7 = scmp.lt.s32.totalorder %s2187_s27, %s2181_s18 }
 0xbd1   : > { %s1926_s25 = sshll.u32 %s2837_s5, 8  ;;  %s2842_s13 = sand.u32 1, %s2838_s23  }
 0xbd2   : > { %s2841_s1 = smov %s2840_s22  ;;  %s2709_s30 = scalar_lea.hbm %s2840_s22, %s1926_s25 }
 0xbd3   : > { %s2716_s29 = scalar_lea.sflag [#allocation4], %s2842_s13  ;;  %p2184_p5 = pneg %p2183_p4 }
 0xbd4   : > { %p2190_p8 = por %p2189_p7, %p2188_p6 }
 0xbd6   : > { %p2191_p10 = pnand %p2190_p8, %p2184_p5 }
 0xbd8   : > { %2194 = shalt.err (!%p2191_p10)
}
 0xbd9   : > { %s2195_s14 = scalar_lea.hbm %s2709_s30, 256  ;;  %s2199_s19 = scalar_lea.hbm %s2841_s1, 512 }
 0xbda   : > { %p2196_p11 = scmp.ne.s32.totalorder %s2709_s30, %s2195_s14  ;;  %p2200_p0 = scmp.lt.u32.totalorder %s2709_s30, %s2841_s1 }
 0xbdb   : > { %p2201_p1 = scmp.lt.u32.totalorder %s2199_s19, %s2195_s14  ;;  %p2203_p4 = scmp.lt.u32.totalorder %s2195_s14, %s2709_s30 }
 0xbdc   : > { %p2197_p12 = pnand %p2196_p11, %p2418_p3 }
 0xbdd   : > { %p2202_p2 = por %p2201_p1, %p2200_p0 }
 0xbde   : > { %p2198_p13 = pneg %p2197_p12 }
 0xbdf   : > { %p2204_p5 = por %p2203_p4, %p2202_p2 }
 0xbe1   : > { %p2205_p6 = pnand %p2204_p5, %p2198_p13 }
 0xbe3   : > { %2208 = shalt.err (!%p2205_p6)
}
 0xbe4   : > { %s2288_s23 = smov 128  }
 0xbe5   : > { %2041 = dma.vmem_to_hbm [thread:$0]  (%p2418_p3), %s2712_s21, 256, %s2709_s30, %s2716_s29, %s2288_s23, %s2288_s23, %s2284_s28  }
 0xbe6 PF: > { %s2843_s25 = sld [smem:[#allocation13_spill]]  ;;  %s2844_s15 = sld [smem:[#allocation6_spill]] }
 0xbec   : > { %p2047_p7 = scmp.ge.s32.totalorder %s2843_s25, 2  ;;  %s1688_s22 = sand.u32 1, %s2844_s15  }
 0xbed   : > { %s1689_s13 = scalar_lea.sflag [#allocation4], %s1688_s22 }
 0xbee   : > { %p2044_p8 = pnand %p2047_p7, %p2428_p9 }
 0xbf0   : > { %2242 = dma.done.wait (!%p2044_p8), %s1689_s13, 256  }
 0xbf1   : > { %2244 = vsyncadd (!%p2044_p8), %s1689_s13, 4294967040  ;;  %s28_s25 = sadd.s32 1, %s2843_s25   ;;  %s2846_s18 = sld [smem:[#allocation7_spill]] }
 0xbf2   : > { %p25_p10 = scmp.ge.s32.totalorder %s28_s25, 6   ;;  %s2847_s19 = sld [smem:[#allocation8_spill]] }
 0xbf3   : > { %s2848_s20 = sld [smem:[#allocation18_spill]]  ;;  %s2849_s21 = sld [smem:[#allocation11_spill]] }
 0xbf4   : > { %s2850_s22 = sld [smem:[#allocation12_spill]]  ;;  %s2851_s23 = sld [smem:[#allocation14_spill]] }
 0xbf5   : > { %s2852_s24 = sld [smem:[#allocation16_spill]]  ;;  %27 = sbr.rel (!%p25_p10) target bundleno = 13 (0xd), region = 159 }
 0xbfc   :  { %1694 = vsyncpa [#allocation4], 1 }
 0xbfd   :  { %1696 = vsyncpa [#allocation4 + $0x1], 1 }

</bundles_post_ra>
